<compile_context>
chip_gen: v7x
topology: tpu7x:2x2x1
jax: 0.10.0
libtpu: 0.0.40
codegen_flags: <defaults>
</compile_context>

<pallas_src>
import math
from functools import partial

import jax
import jax.numpy as jnp
from jax import lax
from jax.experimental import pallas as pl
from jax.experimental.pallas import tpu as pltpu


# --------------------------------------------------------------------------
# Pallas kernel: nearest upsample + zero-pad + 3x3 conv (s=1,p=1) + folded BN
# + ReLU for one batch element.
# --------------------------------------------------------------------------
def _upsample_conv3x3_bn_relu_kernel(x_ref, rwp_ref, w_ref, scale_ref, shift_ref,
                                     o_ref, xp_ref, *, Ho, Wo, Cin, Cout, h_runs):
    # x_ref    : (1, H_in, W_in, Cin) f32   pre-upsample input tile (one image)
    # rwp_ref  : (Wp, W_in)           bf16  W replication + pad matrix  (resident)
    # w_ref    : (9, Cin, Cout)       bf16  conv weight, tap order kh*3+kw (resident)
    # scale_ref: (1, Cout)            f32   folded BN scale                (resident)
    # shift_ref: (1, Cout)            f32   folded BN shift + conv bias    (resident)
    # o_ref    : (1, Ho*Wo, Cout)     f32   output (flat spatial)
    # xp_ref   : (Hp, Wp, Cin)        bf16  VMEM scratch: padded upsampled image
    Hp, Wp = Ho + 2, Wo + 2

    # ---- build padded, upsampled image directly in VMEM ---------------------
    rwp = rwp_ref[...]                                        # (Wp, W_in) bf16
    zero_row = jnp.zeros((1, Wp, Cin), jnp.bfloat16)
    xp_ref[0:1] = zero_row                                    # top pad (every step)
    xp_ref[Hp - 1:Hp] = zero_row                              # bottom pad
    for src, start, length in h_runs:                         # static, unrolled
        # W-axis nearest upsample + left/right pad as one tiny MXU matmul.
        row = jnp.dot(rwp, x_ref[0, src].astype(jnp.bfloat16),
                      preferred_element_type=jnp.float32)     # (Wp, Cin), exact copy
        # H-axis nearest upsample: broadcast over the run of output rows.
        xp_ref[1 + start:1 + start + length] = jnp.broadcast_to(
            row.astype(jnp.bfloat16)[None], (length, Wp, Cin))

    # ---- 3x3 conv as 9 shifted matmuls on the MXU, f32 accumulation ---------
    xp = xp_ref[...]                                          # (Hp, Wp, Cin) bf16
    acc = jnp.zeros((Ho * Wo, Cout), jnp.float32)
    for kh in range(3):                                       # static 3x3 tap loop
        for kw in range(3):
            win = xp[kh:kh + Ho, kw:kw + Wo, :].reshape(Ho * Wo, Cin)
            acc = acc + jnp.dot(win, w_ref[kh * 3 + kw],
                                preferred_element_type=jnp.float32)

    # ---- folded BatchNorm (eval) + ReLU epilogue (f32, VPU) ------------------
    y = jnp.maximum(acc * scale_ref[...] + shift_ref[...], 0.0)
    o_ref[0] = y.astype(o_ref.dtype)


def upsample_conv3x3_bn_relu(x_nhwc, size, w, scale, shift):
    """x_nhwc: (N,H_in,W_in,Cin) f32; w: (3,3,Cin,Cout) -> (N,Ho,Wo,Cout) f32."""
    N, H_in, W_in, Cin = x_nhwc.shape
    Cout = w.shape[-1]
    Ho, Wo = int(size[0]), int(size[1])
    Hp, Wp = Ho + 2, Wo + 2

    # F.interpolate(mode='nearest'): src = floor(dst * in / out) — static maps.
    idx_h = [(r * H_in) // Ho for r in range(Ho)]
    h_runs, r = [], 0
    while r < Ho:                        # group output rows sharing a source row
        src, r0 = idx_h[r], r
        while r < Ho and idx_h[r] == src:
            r += 1
        h_runs.append((src, r0, r - r0))
    h_runs = tuple(h_runs)

    iw = (jnp.arange(Wo) * W_in) // Wo
    rwp = jnp.pad((iw[:, None] == jnp.arange(W_in)[None, :]).astype(jnp.bfloat16),
                  ((1, 1), (0, 0)))                           # (Wp, W_in), 0/1

    wk = w.reshape(9, Cin, Cout).astype(jnp.bfloat16)
    scale2 = scale.reshape(1, Cout).astype(jnp.float32)
    shift2 = shift.reshape(1, Cout).astype(jnp.float32)

    # VMEM budget: BlockSpec double-buffers every block; scratch + big in-kernel
    # temporaries on top.  Sized against v7x's 64 MiB physical VMEM.
    in_blk = H_in * W_in * Cin * 4
    rw_blk = Wp * W_in * 2
    w_blk = 9 * Cin * Cout * 2
    sc_blk = 2 * Cout * 4
    out_blk = Ho * Wo * Cout * 4
    scratch = Hp * Wp * Cin * 2
    vmem_limit = int(min(max(2 * (in_blk + rw_blk + w_blk + sc_blk + out_blk)
                             + 3 * scratch + 2 * out_blk + (8 << 20),
                             16 << 20), 64 << 20))

    flops = int(N * (2 * 9 * Ho * Wo * Cin * Cout
                     + 2 * len(h_runs) * Wp * W_in * Cin
                     + 3 * Ho * Wo * Cout))
    bytes_accessed = int(N * (in_blk + out_blk) + rw_blk + w_blk + 2 * sc_blk)

    kernel = partial(_upsample_conv3x3_bn_relu_kernel,
                     Ho=Ho, Wo=Wo, Cin=Cin, Cout=Cout, h_runs=h_runs)
    out = pl.pallas_call(
        kernel,
        out_shape=jax.ShapeDtypeStruct((N, Ho * Wo, Cout), jnp.float32),
        grid=(N,),
        in_specs=[
            pl.BlockSpec((1, H_in, W_in, Cin), lambda n: (n, 0, 0, 0)),  # per-image
            pl.BlockSpec((Wp, W_in), lambda n: (0, 0)),                  # resident
            pl.BlockSpec((9, Cin, Cout), lambda n: (0, 0, 0)),           # resident
            pl.BlockSpec((1, Cout), lambda n: (0, 0)),                   # resident
            pl.BlockSpec((1, Cout), lambda n: (0, 0)),                   # resident
        ],
        out_specs=pl.BlockSpec((1, Ho * Wo, Cout), lambda n: (n, 0, 0)),
        scratch_shapes=[pltpu.VMEM((Hp, Wp, Cin), jnp.bfloat16)],
        compiler_params=pltpu.CompilerParams(
            dimension_semantics=("parallel",),        # batch independent -> 2 TCs on v7x
            vmem_limit_bytes=vmem_limit),
        cost_estimate=pl.CostEstimate(flops=flops, transcendentals=0,
                                      bytes_accessed=bytes_accessed),
    )(x_nhwc, rwp, wk, scale2, shift2)
    return out.reshape(N, Ho, Wo, Cout)


# --------------------------------------------------------------------------
# Reference-only helper: F.interpolate(mode='nearest') in plain JAX.
# --------------------------------------------------------------------------
def nearest_resize(x_nhwc, size):
    H, W = x_nhwc.shape[1], x_nhwc.shape[2]
    Ho, Wo = size
    idx_h = (jnp.arange(Ho) * H) // Ho
    idx_w = (jnp.arange(Wo) * W) // Wo
    return x_nhwc[:, idx_h][:, :, idx_w]


# --------------------------------------------------------------------------
# DecoderUpsample forward (k=3, s=1, p=1, mode='nearest' — the ABINet config)
# --------------------------------------------------------------------------
def decoder_upsample_forward(x_nhwc, params, size):
    w, b, gamma, beta, mean, var = params
    eps = 1e-5
    scale = gamma / jnp.sqrt(var + eps)           # BN(eval) folded with conv bias
    shift = (b - mean) * scale + beta
    return upsample_conv3x3_bn_relu(x_nhwc, size, w, scale, shift)


if __name__ == "__main__":
    key = jax.random.PRNGKey(0)
    # Small shapes: N=2, in_c=32, out_c=64, input 4x16 upsampled to size=(8, 32).
    N, Cin, Cout, H, W = 2, 32, 64, 4, 16
    size = (8, 32)

    k1, k2, k3, k4, k5, kx = jax.random.split(key, 6)
    w = jax.random.normal(k1, (3, 3, Cin, Cout), jnp.float32) / math.sqrt(9 * Cin)
    b = 0.1 * jax.random.normal(k2, (Cout,), jnp.float32)
    gamma = 1.0 + 0.1 * jax.random.normal(k3, (Cout,), jnp.float32)
    beta = 0.1 * jax.random.normal(k4, (Cout,), jnp.float32)
    mean = 0.1 * jax.random.normal(k5, (Cout,), jnp.float32)   # BN eval running stats
    var = jnp.ones((Cout,), jnp.float32)
    params = (w, b, gamma, beta, mean, var)

    # NHWC input; the PyTorch input would be NCHW (2, 32, 4, 16).
    x = jax.random.normal(kx, (N, H, W, Cin), jnp.float32)

    fwd = jax.jit(partial(decoder_upsample_forward, size=size))
    out = fwd(x, params)
    jax.block_until_ready(out)

    # f32 XLA reference (the kernel uses bf16 MXU operands -> loose tolerance).
    x_up = nearest_resize(x, size)
    eps = 1e-5
    scale = gamma / jnp.sqrt(var + eps)
    shift = (b - mean) * scale + beta
    ref = lax.conv_general_dilated(
        x_up, w, window_strides=(1, 1), padding=((1, 1), (1, 1)),
        dimension_numbers=("NHWC", "HWIO", "NHWC"))
    ref = jnp.maximum(ref * scale + shift, 0.0)

    assert out.shape == (N, size[0], size[1], Cout)
    assert bool(jnp.all(jnp.isfinite(out)))
    assert bool(jnp.all(out >= 0.0))                       # ReLU
    assert bool(jnp.allclose(out, ref, atol=5e-2, rtol=5e-2))
    print("KERNEL_OK")
</pallas_src>

<mosaic_0001>
module attributes {stable_mosaic.version = 11 : i64} {
  func.func @_upsample_conv3x3_bn_relu_kernel(%arg0: i32, %arg1: memref<1x4x16x32xf32, #tpu.memory_space<vmem>>, %arg2: memref<34x16xbf16, #tpu.memory_space<vmem>>, %arg3: memref<9x32x64xbf16, #tpu.memory_space<vmem>>, %arg4: memref<1x64xf32, #tpu.memory_space<vmem>>, %arg5: memref<1x64xf32, #tpu.memory_space<vmem>>, %arg6: memref<1x256x64xf32, #tpu.memory_space<vmem>>, %arg7: memref<10x34x32xbf16, #tpu.memory_space<vmem>>) attributes {dimension_semantics = [#tpu.dimension_semantics<parallel>], iteration_bounds = array<i64: 2>, scalar_prefetch = 0 : i64, scratch_operands = 1 : i64, tpu.core_type = #tpu.core_type<tc>, window_params = [{transform_indices = @transform_0, window_bounds = array<i64: 1, 4, 16, 32>}, {pipeline_mode = #tpu.pipeline_mode<synchronous>, transform_indices = @transform_1, window_bounds = array<i64: 34, 16>}, {pipeline_mode = #tpu.pipeline_mode<synchronous>, transform_indices = @transform_2, window_bounds = array<i64: 9, 32, 64>}, {pipeline_mode = #tpu.pipeline_mode<synchronous>, transform_indices = @transform_3, window_bounds = array<i64: 1, 64>}, {pipeline_mode = #tpu.pipeline_mode<synchronous>, transform_indices = @transform_4, window_bounds = array<i64: 1, 64>}, {transform_indices = @transform_5, window_bounds = array<i64: 1, 256, 64>}]} {
    %c0 = arith.constant 0 : index
    %c0_0 = arith.constant 0 : index
    %0 = vector.load %arg2[%c0, %c0_0] : memref<34x16xbf16, #tpu.memory_space<vmem>>, vector<34x16xbf16>
    %cst = arith.constant 0.000000e+00 : bf16
    %1 = vector.broadcast %cst : bf16 to vector<1x34x32xbf16>
    %c0_1 = arith.constant 0 : index
    %c0_2 = arith.constant 0 : index
    %c0_3 = arith.constant 0 : index
    %2 = vector.load %arg7[%c0_1, %c0_2, %c0_3] : memref<10x34x32xbf16, #tpu.memory_space<vmem>>, vector<1x34x32xbf16>
    tpu.vector_store %arg7[%c0_1, %c0_2, %c0_3], %1 {strides = array<i32>} : memref<10x34x32xbf16, #tpu.memory_space<vmem>>, vector<1x34x32xbf16>,
    %c9 = arith.constant 9 : index
    %c0_4 = arith.constant 0 : index
    %c0_5 = arith.constant 0 : index
    %3 = vector.load %arg7[%c9, %c0_4, %c0_5] : memref<10x34x32xbf16, #tpu.memory_space<vmem>>, vector<1x34x32xbf16>
    tpu.vector_store %arg7[%c9, %c0_4, %c0_5], %1 {strides = array<i32>} : memref<10x34x32xbf16, #tpu.memory_space<vmem>>, vector<1x34x32xbf16>,
    %c0_6 = arith.constant 0 : index
    %c0_7 = arith.constant 0 : index
    %c0_8 = arith.constant 0 : index
    %c0_9 = arith.constant 0 : index
    %4 = vector.load %arg1[%c0_6, %c0_7, %c0_8, %c0_9] : memref<1x4x16x32xf32, #tpu.memory_space<vmem>>, vector<1x1x16x32xf32>
    %5 = vector.shape_cast %4 : vector<1x1x16x32xf32> to vector<16x32xf32>
    %6 = arith.truncf %5 : vector<16x32xf32> to vector<16x32xbf16>
    %cst_10 = arith.constant dense<0.000000e+00> : vector<34x32xf32>
    %7 = tpu.matmul %0, %6, %cst_10 {dimension_numbers = #tpu.dot_dimension_numbers<[1], [0], [0], [1], [0, 0, 1, 1], [], []>} : vector<34x16xbf16>, vector<16x32xbf16>, vector<34x32xf32> -> vector<34x32xf32>
    %8 = arith.truncf %7 : vector<34x32xf32> to vector<34x32xbf16>
    %9 = vector.shape_cast %8 : vector<34x32xbf16> to vector<1x34x32xbf16>
    %10 = vector.shape_cast %9 : vector<1x34x32xbf16> to vector<1x34x32xbf16>
    %11 = vector.broadcast %10 : vector<1x34x32xbf16> to vector<2x34x32xbf16>
    %c1 = arith.constant 1 : index
    %c0_11 = arith.constant 0 : index
    %c0_12 = arith.constant 0 : index
    %12 = vector.load %arg7[%c1, %c0_11, %c0_12] : memref<10x34x32xbf16, #tpu.memory_space<vmem>>, vector<2x34x32xbf16>
    tpu.vector_store %arg7[%c1, %c0_11, %c0_12], %11 {strides = array<i32>} : memref<10x34x32xbf16, #tpu.memory_space<vmem>>, vector<2x34x32xbf16>,
    %c0_13 = arith.constant 0 : index
    %c1_14 = arith.constant 1 : index
    %c0_15 = arith.constant 0 : index
    %c0_16 = arith.constant 0 : index
    %13 = vector.load %arg1[%c0_13, %c1_14, %c0_15, %c0_16] : memref<1x4x16x32xf32, #tpu.memory_space<vmem>>, vector<1x1x16x32xf32>
    %14 = vector.shape_cast %13 : vector<1x1x16x32xf32> to vector<16x32xf32>
    %15 = arith.truncf %14 : vector<16x32xf32> to vector<16x32xbf16>
    %cst_17 = arith.constant dense<0.000000e+00> : vector<34x32xf32>
    %16 = tpu.matmul %0, %15, %cst_17 {dimension_numbers = #tpu.dot_dimension_numbers<[1], [0], [0], [1], [0, 0, 1, 1], [], []>} : vector<34x16xbf16>, vector<16x32xbf16>, vector<34x32xf32> -> vector<34x32xf32>
    %17 = arith.truncf %16 : vector<34x32xf32> to vector<34x32xbf16>
    %18 = vector.shape_cast %17 : vector<34x32xbf16> to vector<1x34x32xbf16>
    %19 = vector.shape_cast %18 : vector<1x34x32xbf16> to vector<1x34x32xbf16>
    %20 = vector.broadcast %19 : vector<1x34x32xbf16> to vector<2x34x32xbf16>
    %c3 = arith.constant 3 : index
    %c0_18 = arith.constant 0 : index
    %c0_19 = arith.constant 0 : index
    %21 = vector.load %arg7[%c3, %c0_18, %c0_19] : memref<10x34x32xbf16, #tpu.memory_space<vmem>>, vector<2x34x32xbf16>
    tpu.vector_store %arg7[%c3, %c0_18, %c0_19], %20 {strides = array<i32>} : memref<10x34x32xbf16, #tpu.memory_space<vmem>>, vector<2x34x32xbf16>,
    %c0_20 = arith.constant 0 : index
    %c2 = arith.constant 2 : index
    %c0_21 = arith.constant 0 : index
    %c0_22 = arith.constant 0 : index
    %22 = vector.load %arg1[%c0_20, %c2, %c0_21, %c0_22] : memref<1x4x16x32xf32, #tpu.memory_space<vmem>>, vector<1x1x16x32xf32>
    %23 = vector.shape_cast %22 : vector<1x1x16x32xf32> to vector<16x32xf32>
    %24 = arith.truncf %23 : vector<16x32xf32> to vector<16x32xbf16>
    %cst_23 = arith.constant dense<0.000000e+00> : vector<34x32xf32>
    %25 = tpu.matmul %0, %24, %cst_23 {dimension_numbers = #tpu.dot_dimension_numbers<[1], [0], [0], [1], [0, 0, 1, 1], [], []>} : vector<34x16xbf16>, vector<16x32xbf16>, vector<34x32xf32> -> vector<34x32xf32>
    %26 = arith.truncf %25 : vector<34x32xf32> to vector<34x32xbf16>
    %27 = vector.shape_cast %26 : vector<34x32xbf16> to vector<1x34x32xbf16>
    %28 = vector.shape_cast %27 : vector<1x34x32xbf16> to vector<1x34x32xbf16>
    %29 = vector.broadcast %28 : vector<1x34x32xbf16> to vector<2x34x32xbf16>
    %c5 = arith.constant 5 : index
    %c0_24 = arith.constant 0 : index
    %c0_25 = arith.constant 0 : index
    %30 = vector.load %arg7[%c5, %c0_24, %c0_25] : memref<10x34x32xbf16, #tpu.memory_space<vmem>>, vector<2x34x32xbf16>
    tpu.vector_store %arg7[%c5, %c0_24, %c0_25], %29 {strides = array<i32>} : memref<10x34x32xbf16, #tpu.memory_space<vmem>>, vector<2x34x32xbf16>,
    %c0_26 = arith.constant 0 : index
    %c3_27 = arith.constant 3 : index
    %c0_28 = arith.constant 0 : index
    %c0_29 = arith.constant 0 : index
    %31 = vector.load %arg1[%c0_26, %c3_27, %c0_28, %c0_29] : memref<1x4x16x32xf32, #tpu.memory_space<vmem>>, vector<1x1x16x32xf32>
    %32 = vector.shape_cast %31 : vector<1x1x16x32xf32> to vector<16x32xf32>
    %33 = arith.truncf %32 : vector<16x32xf32> to vector<16x32xbf16>
    %cst_30 = arith.constant dense<0.000000e+00> : vector<34x32xf32>
    %34 = tpu.matmul %0, %33, %cst_30 {dimension_numbers = #tpu.dot_dimension_numbers<[1], [0], [0], [1], [0, 0, 1, 1], [], []>} : vector<34x16xbf16>, vector<16x32xbf16>, vector<34x32xf32> -> vector<34x32xf32>
    %35 = arith.truncf %34 : vector<34x32xf32> to vector<34x32xbf16>
    %36 = vector.shape_cast %35 : vector<34x32xbf16> to vector<1x34x32xbf16>
    %37 = vector.shape_cast %36 : vector<1x34x32xbf16> to vector<1x34x32xbf16>
    %38 = vector.broadcast %37 : vector<1x34x32xbf16> to vector<2x34x32xbf16>
    %c7 = arith.constant 7 : index
    %c0_31 = arith.constant 0 : index
    %c0_32 = arith.constant 0 : index
    %39 = vector.load %arg7[%c7, %c0_31, %c0_32] : memref<10x34x32xbf16, #tpu.memory_space<vmem>>, vector<2x34x32xbf16>
    tpu.vector_store %arg7[%c7, %c0_31, %c0_32], %38 {strides = array<i32>} : memref<10x34x32xbf16, #tpu.memory_space<vmem>>, vector<2x34x32xbf16>,
    %c0_33 = arith.constant 0 : index
    %c0_34 = arith.constant 0 : index
    %c0_35 = arith.constant 0 : index
    %40 = vector.load %arg7[%c0_33, %c0_34, %c0_35] : memref<10x34x32xbf16, #tpu.memory_space<vmem>>, vector<10x34x32xbf16>
    %cst_36 = arith.constant 0.000000e+00 : f32
    %41 = vector.broadcast %cst_36 : f32 to vector<256x64xf32>
    %42 = vector.extract_strided_slice %40 {offsets = [0, 0, 0], sizes = [8, 32, 32], strides = [1, 1, 1]} : vector<10x34x32xbf16> to vector<8x32x32xbf16>
    %43 = vector.shape_cast %42 : vector<8x32x32xbf16> to vector<256x32xbf16>
    %c0_37 = arith.constant 0 : index
    %c0_38 = arith.constant 0 : index
    %c0_39 = arith.constant 0 : index
    %44 = vector.load %arg3[%c0_37, %c0_38, %c0_39] : memref<9x32x64xbf16, #tpu.memory_space<vmem>>, vector<1x32x64xbf16>
    %45 = vector.shape_cast %44 : vector<1x32x64xbf16> to vector<32x64xbf16>
    %cst_40 = arith.constant dense<0.000000e+00> : vector<256x64xf32>
    %46 = tpu.matmul %43, %45, %cst_40 {dimension_numbers = #tpu.dot_dimension_numbers<[1], [0], [0], [1], [0, 0, 1, 1], [], []>} : vector<256x32xbf16>, vector<32x64xbf16>, vector<256x64xf32> -> vector<256x64xf32>
    %47 = arith.addf %41, %46 : vector<256x64xf32>
    %48 = vector.extract_strided_slice %40 {offsets = [0, 1, 0], sizes = [8, 32, 32], strides = [1, 1, 1]} : vector<10x34x32xbf16> to vector<8x32x32xbf16>
    %49 = vector.shape_cast %48 : vector<8x32x32xbf16> to vector<256x32xbf16>
    %c1_41 = arith.constant 1 : index
    %c0_42 = arith.constant 0 : index
    %c0_43 = arith.constant 0 : index
    %50 = vector.load %arg3[%c1_41, %c0_42, %c0_43] : memref<9x32x64xbf16, #tpu.memory_space<vmem>>, vector<1x32x64xbf16>
    %51 = vector.shape_cast %50 : vector<1x32x64xbf16> to vector<32x64xbf16>
    %cst_44 = arith.constant dense<0.000000e+00> : vector<256x64xf32>
    %52 = tpu.matmul %49, %51, %cst_44 {dimension_numbers = #tpu.dot_dimension_numbers<[1], [0], [0], [1], [0, 0, 1, 1], [], []>} : vector<256x32xbf16>, vector<32x64xbf16>, vector<256x64xf32> -> vector<256x64xf32>
    %53 = arith.addf %47, %52 : vector<256x64xf32>
    %54 = vector.extract_strided_slice %40 {offsets = [0, 2, 0], sizes = [8, 32, 32], strides = [1, 1, 1]} : vector<10x34x32xbf16> to vector<8x32x32xbf16>
    %55 = vector.shape_cast %54 : vector<8x32x32xbf16> to vector<256x32xbf16>
    %c2_45 = arith.constant 2 : index
    %c0_46 = arith.constant 0 : index
    %c0_47 = arith.constant 0 : index
    %56 = vector.load %arg3[%c2_45, %c0_46, %c0_47] : memref<9x32x64xbf16, #tpu.memory_space<vmem>>, vector<1x32x64xbf16>
    %57 = vector.shape_cast %56 : vector<1x32x64xbf16> to vector<32x64xbf16>
    %cst_48 = arith.constant dense<0.000000e+00> : vector<256x64xf32>
    %58 = tpu.matmul %55, %57, %cst_48 {dimension_numbers = #tpu.dot_dimension_numbers<[1], [0], [0], [1], [0, 0, 1, 1], [], []>} : vector<256x32xbf16>, vector<32x64xbf16>, vector<256x64xf32> -> vector<256x64xf32>
    %59 = arith.addf %53, %58 : vector<256x64xf32>
    %60 = vector.extract_strided_slice %40 {offsets = [1, 0, 0], sizes = [8, 32, 32], strides = [1, 1, 1]} : vector<10x34x32xbf16> to vector<8x32x32xbf16>
    %61 = vector.shape_cast %60 : vector<8x32x32xbf16> to vector<256x32xbf16>
    %c3_49 = arith.constant 3 : index
    %c0_50 = arith.constant 0 : index
    %c0_51 = arith.constant 0 : index
    %62 = vector.load %arg3[%c3_49, %c0_50, %c0_51] : memref<9x32x64xbf16, #tpu.memory_space<vmem>>, vector<1x32x64xbf16>
    %63 = vector.shape_cast %62 : vector<1x32x64xbf16> to vector<32x64xbf16>
    %cst_52 = arith.constant dense<0.000000e+00> : vector<256x64xf32>
    %64 = tpu.matmul %61, %63, %cst_52 {dimension_numbers = #tpu.dot_dimension_numbers<[1], [0], [0], [1], [0, 0, 1, 1], [], []>} : vector<256x32xbf16>, vector<32x64xbf16>, vector<256x64xf32> -> vector<256x64xf32>
    %65 = arith.addf %59, %64 : vector<256x64xf32>
    %66 = vector.extract_strided_slice %40 {offsets = [1, 1, 0], sizes = [8, 32, 32], strides = [1, 1, 1]} : vector<10x34x32xbf16> to vector<8x32x32xbf16>
    %67 = vector.shape_cast %66 : vector<8x32x32xbf16> to vector<256x32xbf16>
    %c4 = arith.constant 4 : index
    %c0_53 = arith.constant 0 : index
    %c0_54 = arith.constant 0 : index
    %68 = vector.load %arg3[%c4, %c0_53, %c0_54] : memref<9x32x64xbf16, #tpu.memory_space<vmem>>, vector<1x32x64xbf16>
    %69 = vector.shape_cast %68 : vector<1x32x64xbf16> to vector<32x64xbf16>
    %cst_55 = arith.constant dense<0.000000e+00> : vector<256x64xf32>
    %70 = tpu.matmul %67, %69, %cst_55 {dimension_numbers = #tpu.dot_dimension_numbers<[1], [0], [0], [1], [0, 0, 1, 1], [], []>} : vector<256x32xbf16>, vector<32x64xbf16>, vector<256x64xf32> -> vector<256x64xf32>
    %71 = arith.addf %65, %70 : vector<256x64xf32>
    %72 = vector.extract_strided_slice %40 {offsets = [1, 2, 0], sizes = [8, 32, 32], strides = [1, 1, 1]} : vector<10x34x32xbf16> to vector<8x32x32xbf16>
    %73 = vector.shape_cast %72 : vector<8x32x32xbf16> to vector<256x32xbf16>
    %c5_56 = arith.constant 5 : index
    %c0_57 = arith.constant 0 : index
    %c0_58 = arith.constant 0 : index
    %74 = vector.load %arg3[%c5_56, %c0_57, %c0_58] : memref<9x32x64xbf16, #tpu.memory_space<vmem>>, vector<1x32x64xbf16>
    %75 = vector.shape_cast %74 : vector<1x32x64xbf16> to vector<32x64xbf16>
    %cst_59 = arith.constant dense<0.000000e+00> : vector<256x64xf32>
    %76 = tpu.matmul %73, %75, %cst_59 {dimension_numbers = #tpu.dot_dimension_numbers<[1], [0], [0], [1], [0, 0, 1, 1], [], []>} : vector<256x32xbf16>, vector<32x64xbf16>, vector<256x64xf32> -> vector<256x64xf32>
    %77 = arith.addf %71, %76 : vector<256x64xf32>
    %78 = vector.extract_strided_slice %40 {offsets = [2, 0, 0], sizes = [8, 32, 32], strides = [1, 1, 1]} : vector<10x34x32xbf16> to vector<8x32x32xbf16>
    %79 = vector.shape_cast %78 : vector<8x32x32xbf16> to vector<256x32xbf16>
    %c6 = arith.constant 6 : index
    %c0_60 = arith.constant 0 : index
    %c0_61 = arith.constant 0 : index
    %80 = vector.load %arg3[%c6, %c0_60, %c0_61] : memref<9x32x64xbf16, #tpu.memory_space<vmem>>, vector<1x32x64xbf16>
    %81 = vector.shape_cast %80 : vector<1x32x64xbf16> to vector<32x64xbf16>
    %cst_62 = arith.constant dense<0.000000e+00> : vector<256x64xf32>
    %82 = tpu.matmul %79, %81, %cst_62 {dimension_numbers = #tpu.dot_dimension_numbers<[1], [0], [0], [1], [0, 0, 1, 1], [], []>} : vector<256x32xbf16>, vector<32x64xbf16>, vector<256x64xf32> -> vector<256x64xf32>
    %83 = arith.addf %77, %82 : vector<256x64xf32>
    %84 = vector.extract_strided_slice %40 {offsets = [2, 1, 0], sizes = [8, 32, 32], strides = [1, 1, 1]} : vector<10x34x32xbf16> to vector<8x32x32xbf16>
    %85 = vector.shape_cast %84 : vector<8x32x32xbf16> to vector<256x32xbf16>
    %c7_63 = arith.constant 7 : index
    %c0_64 = arith.constant 0 : index
    %c0_65 = arith.constant 0 : index
    %86 = vector.load %arg3[%c7_63, %c0_64, %c0_65] : memref<9x32x64xbf16, #tpu.memory_space<vmem>>, vector<1x32x64xbf16>
    %87 = vector.shape_cast %86 : vector<1x32x64xbf16> to vector<32x64xbf16>
    %cst_66 = arith.constant dense<0.000000e+00> : vector<256x64xf32>
    %88 = tpu.matmul %85, %87, %cst_66 {dimension_numbers = #tpu.dot_dimension_numbers<[1], [0], [0], [1], [0, 0, 1, 1], [], []>} : vector<256x32xbf16>, vector<32x64xbf16>, vector<256x64xf32> -> vector<256x64xf32>
    %89 = arith.addf %83, %88 : vector<256x64xf32>
    %90 = vector.extract_strided_slice %40 {offsets = [2, 2, 0], sizes = [8, 32, 32], strides = [1, 1, 1]} : vector<10x34x32xbf16> to vector<8x32x32xbf16>
    %91 = vector.shape_cast %90 : vector<8x32x32xbf16> to vector<256x32xbf16>
    %c8 = arith.constant 8 : index
    %c0_67 = arith.constant 0 : index
    %c0_68 = arith.constant 0 : index
    %92 = vector.load %arg3[%c8, %c0_67, %c0_68] : memref<9x32x64xbf16, #tpu.memory_space<vmem>>, vector<1x32x64xbf16>
    %93 = vector.shape_cast %92 : vector<1x32x64xbf16> to vector<32x64xbf16>
    %cst_69 = arith.constant dense<0.000000e+00> : vector<256x64xf32>
    %94 = tpu.matmul %91, %93, %cst_69 {dimension_numbers = #tpu.dot_dimension_numbers<[1], [0], [0], [1], [0, 0, 1, 1], [], []>} : vector<256x32xbf16>, vector<32x64xbf16>, vector<256x64xf32> -> vector<256x64xf32>
    %95 = arith.addf %89, %94 : vector<256x64xf32>
    %c0_70 = arith.constant 0 : index
    %c0_71 = arith.constant 0 : index
    %96 = vector.load %arg4[%c0_70, %c0_71] : memref<1x64xf32, #tpu.memory_space<vmem>>, vector<1x64xf32>
    %97 = vector.broadcast %96 : vector<1x64xf32> to vector<256x64xf32>
    %98 = arith.mulf %95, %97 : vector<256x64xf32>
    %c0_72 = arith.constant 0 : index
    %c0_73 = arith.constant 0 : index
    %99 = vector.load %arg5[%c0_72, %c0_73] : memref<1x64xf32, #tpu.memory_space<vmem>>, vector<1x64xf32>
    %100 = vector.broadcast %99 : vector<1x64xf32> to vector<256x64xf32>
    %101 = arith.addf %98, %100 : vector<256x64xf32>
    %cst_74 = arith.constant 0.000000e+00 : f32
    %102 = vector.broadcast %cst_74 : f32 to vector<256x64xf32>
    %103 = arith.maximumf %101, %102 : vector<256x64xf32>
    %c0_75 = arith.constant 0 : index
    %c0_76 = arith.constant 0 : index
    %c0_77 = arith.constant 0 : index
    %104 = vector.load %arg6[%c0_75, %c0_76, %c0_77] : memref<1x256x64xf32, #tpu.memory_space<vmem>>, vector<1x256x64xf32>
    %105 = vector.shape_cast %104 : vector<1x256x64xf32> to vector<256x64xf32>
    %106 = vector.shape_cast %103 : vector<256x64xf32> to vector<1x256x64xf32>
    tpu.vector_store %arg6[%c0_75, %c0_76, %c0_77], %106 {strides = array<i32>} : memref<1x256x64xf32, #tpu.memory_space<vmem>>, vector<1x256x64xf32>,
    return
  }
  func.func @transform_0(%arg0: i32) -> (i32, i32, i32, i32) {
    %c0_i32 = arith.constant 0 : i32
    %c0_i32_0 = arith.constant 0 : i32
    %c0_i32_1 = arith.constant 0 : i32
    %c0_i32_2 = arith.constant 0 : i32
    return %arg0, %c0_i32, %c0_i32_0, %c0_i32_1 : i32, i32, i32, i32
  }
  func.func @transform_1(%arg0: i32) -> (i32, i32) {
    %c0_i32 = arith.constant 0 : i32
    %c0_i32_0 = arith.constant 0 : i32
    %c0_i32_1 = arith.constant 0 : i32
    return %c0_i32, %c0_i32_0 : i32, i32
  }
  func.func @transform_2(%arg0: i32) -> (i32, i32, i32) {
    %c0_i32 = arith.constant 0 : i32
    %c0_i32_0 = arith.constant 0 : i32
    %c0_i32_1 = arith.constant 0 : i32
    %c0_i32_2 = arith.constant 0 : i32
    return %c0_i32, %c0_i32_0, %c0_i32_1 : i32, i32, i32
  }
  func.func @transform_3(%arg0: i32) -> (i32, i32) {
    %c0_i32 = arith.constant 0 : i32
    %c0_i32_0 = arith.constant 0 : i32
    %c0_i32_1 = arith.constant 0 : i32
    return %c0_i32, %c0_i32_0 : i32, i32
  }
  func.func @transform_4(%arg0: i32) -> (i32, i32) {
    %c0_i32 = arith.constant 0 : i32
    %c0_i32_0 = arith.constant 0 : i32
    %c0_i32_1 = arith.constant 0 : i32
    return %c0_i32, %c0_i32_0 : i32, i32
  }
  func.func @transform_5(%arg0: i32) -> (i32, i32, i32) {
    %c0_i32 = arith.constant 0 : i32
    %c0_i32_0 = arith.constant 0 : i32
    %c0_i32_1 = arith.constant 0 : i32
    return %arg0, %c0_i32, %c0_i32_0 : i32, i32, i32
  }
}

</mosaic_0001>

<bundles_post_ra>
// kernel: decoder_upsample_forward.1
= control target key start
LH: loop header
LB: loop body
LE: loop exit
PB: predicated region body
PF: predicated region fallthrough
CT: control target
= control target key end

     0   :  { %10 = vsyncpa [#allocation4], 0  ;;  %s6313_s0 = inlined_call_operand.vmem [shape: f32[2,4,16,32], index: 0, kind: input, shape index: {}]   ;;  %s6314_s1 = inlined_call_operand.vmem [shape: bf16[34,16], index: 1, kind: input, shape index: {}]   ;;  %s6315_s2 = inlined_call_operand.vmem [shape: bf16[9,32,64], index: 2, kind: input, shape index: {}]   ;;  %s6316_s3 = inlined_call_operand.vmem [shape: f32[1,64], index: 3, kind: input, shape index: {}]   ;;  %s6317_s4 = inlined_call_operand.vmem [shape: f32[1,64], index: 4, kind: input, shape index: {}]   ;;  %s6318_s5 = inlined_call_operand.hbm [shape: f32[2,256,64], index: 5, kind: output, shape index: {}]  }
   0x1   :  { %12 = vsyncpa [#allocation4 + $0x1], 0  ;;  %s5052_s18 = smov 0   ;;  %s5054_s19 = smov 0  }
   0x2   :  { %s5056_s20 = smov 0   ;;  %s5058_s21 = smov 0  }
   0x3 LB: > { %s5073_s22 = sadd.s32 4294967295, %s5014_s21   ;;  %s3713_s23 = sadd.s32 4294967294, %s5014_s21   ;;  %s5014_s21 = sphi %s5058_s21, %s6389_s21   ;;  %s5010_s20 = sphi %s5056_s20, %s6388_s20   ;;  %s5006_s19 = sphi %s5054_s19, %s6387_s19   ;;  %s5002_s18 = sphi %s5052_s18, %s6386_s18  }
   0x4   : > { %s5077_s24 = sadd.s32 1, %s5014_s21   ;;  %s135_s25 = sadd.s32 1, %s5010_s20 }
   0x5   : > { %s132_s26 = ssub.s32 %s5014_s21, %s5077_s24  ;;  %p145_p0 = scmp.ne.s32.totalorder %s5010_s20, %s5006_s19 }
   0x6   : > { %p133_p1 = scmp.eq.s32.totalorder %s132_s26, 0  ;;  %p146_p2 = scmp.eq.s32.totalorder %s5073_s22, 1 }
   0x7   : > { %p151_p3 = scmp.ne.s32.totalorder %s5006_s19, %s5002_s18  ;;  %p152_p4 = scmp.eq.s32.totalorder %s3713_s23, 1 }
   0x8   : > { %s5088_s27 = scalar_select %p133_p1, %s5010_s20, %s135_s25  }
   0x9   : > { %p5090_p5 = por %p146_p2, %p145_p0  ;;  %p5094_p6 = por %p152_p4, %p151_p3 }
   0xa   : > { %p3716_p7 = scmp.ge.s32.totalorder %s5014_s21, 1  ;;  %p190_p8 = scmp.lt.s32.totalorder %s5014_s21, 3 }
   0xc   : > { %p191_p9 = pnand %p3716_p7, %p190_p8 }
   0xe   : > { %194 = sbr.rel (%p191_p9) target bundleno = 804 (0x324), region = 40 }
  0x15   : > { %p218_p10 = scmp.lt.s32.totalorder %s5073_s22, 1  ;;  %v5016_v0 = vmov 0.0   ;;  %vm5017_vm0 = vmmov 0   ;;  %v4916_v3 = vld [vmem:[%s6314_s1] sm:$0xff]   ;;  %vm258_vm1 = vcmask 130048   ;;  %v4917_v14 = vld [vmem:[%s6314_s1 + $0x8] sm:$0xff]  }
  0x16   : > { %4232 = vmatprep.subr.bf16.mxu0 %v5016_v0  ;;  %4234 = vmatprep.mubr.msk.bf16.mxu0 %vm5017_vm0, %v5016_v0  ;;  %v4918_v15 = vld [vmem:[%s6314_s1 + $0x10] ss:$0 sps:$4 sm:$0x11]   ;;  %vm229_vm2 = vcmask 257024   ;;  %v5018_v16 = vmov 0   ;;  %vm234_vm3 = vcmask 253952  }
  0x17   : > { %s219_s30 = scalar_select %p218_p10, %s5073_s22, 1  ;;  %4246 = vmatprep.subr.bf16.mxu1 %v5016_v0  ;;  %4248 = vmatprep.mubr.msk.bf16.mxu1 %vm5017_vm0, %v5016_v0  ;;  %230 = vst.msk [vmem:[#allocation2] sm:$0xf] %vm229_vm2, %v5018_v16  ;;  %231 = vst.msk [vmem:[#allocation2 + $0x4] sm:$0xf] %vm229_vm2, %v5018_v16  ;;  %v4919_v17 = vld [vmem:[%s6315_s2 + $0x10] sm:$0xff]  }
  0x18   : > { %232 = vst.msk [vmem:[#allocation2 + $0x8] sm:$0xf] %vm229_vm2, %v5018_v16  ;;  %233 = vst.msk [vmem:[#allocation2 + $0xc] sm:$0xf] %vm229_vm2, %v5018_v16  ;;  %v4920_v18 = vld [vmem:[%s6315_s2 + $0x40] sm:$0xff]   ;;  %v4921_v44 = vld [vmem:[%s6315_s2 + $0x18] sm:$0xff]  }
  0x19   : > { %s4032_s6 = sshll.u32 %s219_s30, 6  ;;  %237 = vst.msk [vmem:[#allocation2 + $0xb4] sm:$0xf] %vm229_vm2, %v5018_v16  ;;  %238 = vst.msk [vmem:[#allocation2 + $0xb8] sm:$0xf] %vm229_vm2, %v5018_v16  ;;  %v4922_v45 = vld [vmem:[%s6315_s2 + $0x48] sm:$0xff]  }
  0x1a   : > { %s222_s9 = scalar_lea.vmem %s6313_s0, %s4032_s6  ;;  %239 = vst.msk [vmem:[#allocation2 + $0xbc] sm:$0xf] %vm229_vm2, %v5018_v16  ;;  %240 = vst.msk [vmem:[#allocation2 + $0xc0] sm:$0xf] %vm229_vm2, %v5018_v16  ;;  %vm686_vm4 = vsmask.f32 3328 }
  0x1b   : > { %v242_v1 = vld [vmem:[%s222_s9] sm:$0xff]  ;;  %v243_v2 = vld [vmem:[%s222_s9 + $0x8] sm:$0xff]  ;;  %v3731_v4 = vld [vmem:[%s222_s9 + $0x10] sm:$0xff]  ;;  %235 = vst.msk [vmem:[#allocation2 + $0x10] sm:$0x1] %vm234_vm3, %v5018_v16  ;;  %vm1106_vm7 = vcmask 261120  }
  0x1c   : > { %v244_v5 = vpack.c.bf16 %v243_v2, %v242_v1  ;;  %v3732_v6 = vld [vmem:[%s222_s9 + $0x18] sm:$0xff]  ;;  %v3741_v7 = vld [vmem:[%s222_s9 + $0x20] sm:$0xff]  ;;  %v3742_v8 = vld [vmem:[%s222_s9 + $0x28] sm:$0xff]  ;;  %241 = vst.msk [vmem:[#allocation2 + $0xc4] sm:$0x1] %vm234_vm3, %v5018_v16  ;;  %vm1625_vm8 = vcmask 1042432  }
  0x1d   : > { %v359_v9 = vpack.c.bf16 %v3732_v6, %v3731_v4  ;;  %v3751_v10 = vld [vmem:[%s222_s9 + $0x30] sm:$0xff]  ;;  %v3752_v11 = vld [vmem:[%s222_s9 + $0x38] sm:$0xff]  ;;  %v451_v12 = vpack.c.bf16 %v3742_v8, %v3741_v7  ;;  %vm687_vm5 = vsmask.f32 7440  ;;  %v4923_v59 = vld [vmem:[%s6315_s2] sm:$0xff]   ;;  %vm1626_vm9 = vcmask 1046532  }
  0x1e   : > { %4233 = vmatpush3.bf16.msra.mxu0 %v244_v5  ;;  %v543_v13 = vpack.c.bf16 %v3752_v11, %v3751_v10  ;;  %v632_v19 = vld [vmem:[#allocation2] sm:$0xf]  ;;  %v633_v20 = vld [vmem:[#allocation2 + $0x4] sm:$0xf]  ;;  %vm5160_vm6 = vmor %vm686_vm4, %vm687_vm5  ;;  %s215_s8 = sand.u32 1, %s5006_s19   ;;  %vm3604_vm11 = vcmask 523264  }
  0x1f   : > { %4247 = vmatpush3.bf16.msra.mxu1 %v359_v9  ;;  %4260 = vmatprep.subr.bf16.mxu0 %v5016_v0  ;;  %v634_v21 = vld [vmem:[#allocation2 + $0x8] sm:$0xf]  ;;  %v690_v22 = vshrl.u32 %v632_v19, 16  ;;  %v693_v23 = vshll.u32 %v632_v19, 16  ;;  %v699_v24 = vshll.u32 %v633_v20, 16  ;;  %v703_v25 = vshrl.u32 %v633_v20, 16  ;;  %vm5423_vm10 = vmor %vm1625_vm8, %vm1626_vm9 }
  0x20   : > { %4274 = vmatprep.subr.bf16.mxu1 %v5016_v0  ;;  %v709_v26 = vshll.u32 %v634_v21, 16  ;;  %v713_v27 = vshrl.u32 %v634_v21, 16  ;;  %v635_v28 = vld [vmem:[#allocation2 + $0xc] sm:$0xf]  ;;  %v5179_v60 = vld [vmem:[%s6315_s2 + $0x50] sm:$0xff]   ;;  %v5189_v62 = vld [vmem:[%s6315_s2 + $0x20] sm:$0xff]  }
  0x21   : > { %4235 = vmatmul.mubr.msk.bf16.vlgmr.msra.gmra.mrb[0].mxu0 %vm258_vm1, %v4916_v3  ;;  %v692_v29 = vrot.slane %v690_v22, 4  ;;  %v695_v30 = vrot.slane %v693_v23, 5  ;;  %v701_v31 = vrot.slane %v699_v24, 5  ;;  %v705_v32 = vrot.slane %v703_v25, 4  ;;  %v4926_v61 = vld [vmem:[%s6315_s2 + $0x8] sm:$0xff]   ;;  %s3717_s13 = sshll.u32 %s215_s8, 8 }
  0x22   : > { %4238 = vmatprep.mubr.msk.bf16.mxu0 %vm5017_vm0, %v5016_v0  ;;  %4249 = vmatmul.mubr.msk.bf16.vlgmr.msra.gmra.mrb[0].mxu1 %vm258_vm1, %v4916_v3  ;;  %v711_v33 = vrot.slane %v709_v26, 5  ;;  %v715_v34 = vrot.slane %v713_v27, 4  ;;  %v719_v35 = vshll.u32 %v635_v28, 16  ;;  %v723_v36 = vshrl.u32 %v635_v28, 16  ;;  %v636_v39 = vld [vmem:[#allocation2 + $0x10] sm:$0x1] }
  0x23   : > { %4252 = vmatprep.mubr.msk.bf16.mxu1 %vm5017_vm0, %v5016_v0  ;;  %4261 = vmatpush3.bf16.msra.mxu0 %v451_v12  ;;  %v696_v37 = vor.u32 %v695_v30, %v692_v29  ;;  %v706_v38 = vor.u32 %v705_v32, %v701_v31  ;;  %v729_v43 = vshll.u32 %v636_v39, 16  ;;  %s6133_s14 = scalar_lea.vmem [#allocation3], %s3717_s13  ;;  %s4053_s15 = sshll.u32 %s5073_s22, 12 }
  0x24   : > { %4275 = vmatpush3.bf16.msra.mxu1 %v543_v13  ;;  %4432 = vmatprep.subr.bf16.mxu0 %v4920_v18  ;;  %v716_v40 = vor.u32 %v715_v34, %v711_v33  ;;  %v721_v41 = vrot.slane %v719_v35, 5  ;;  %v725_v42 = vrot.slane %v723_v36, 4  ;;  %s3651_s16 = sshll.u32 %s6133_s14, 4  ;;  %s6260_s25 = scalar_lea.hbm %s6318_s5, %s4053_s15  ;;  %s6262_s16 = int_to_ptr.vmem [resolvable:$true] %s3651_s16 }
  0x25   : > { %4288 = vmatprep.subr.bf16.mxu1 %v4919_v17  ;;  %v697_v46 = vrot.slane %v696_v37, 4  ;;  %v707_v47 = vrot.slane %v706_v38, 4  ;;  %v731_v51 = vrot.slane %v729_v43, 5  ;;  %s6272_s22 = scalar_lea.sflag [#allocation4], %s215_s8  ;;  %s4952_s26 = scalar_lea.vmem %s6262_s16, 4096 }
  0x26   : > { %v717_v49 = vrot.slane %v716_v40, 4  ;;  %v726_v50 = vor.u32 %v725_v42, %v721_v41  ;;  %p4953_p11 = scmp.ne.s32.totalorder %s6262_s16, %s4952_s26  ;;  %s5019_s30 = smov [#allocation3]  }
  0x27   : > { %v702_v52 = vsel %vm5160_vm6, %v697_v46, %v701_v31  ;;  %v712_v53 = vsel %vm5160_vm6, %v707_v47, %v711_v33  ;;  %s4956_s6 = sshll.u32 %s5019_s30, 4  ;;  %s4957_s6 = int_to_ptr.vmem [resolvable:$false] %s4956_s6 }
  0x28   : > { %v3765_v54 = vcombine.low %v702_v52, %v712_v53  ;;  %v722_v55 = vsel %vm5160_vm6, %v717_v49, %v721_v41  ;;  %v727_v56 = vrot.slane %v726_v50, 4  ;;  %p4954_p12 = pnand %p4953_p11, %p5090_p5  ;;  %s4958_s7 = scalar_lea.vmem %s4957_s6, 8192 }
  0x29   : > { %4239 = vmatmul.mubr.msk.bf16.gmra.mrb[4].mxu0 %vm258_vm1, %v4917_v14  ;;  %p4959_p0 = scmp.lt.s32.totalorder %s6262_s16, %s4957_s6  ;;  %p4960_p1 = scmp.lt.s32.totalorder %s4958_s7, %s4952_s26 }
  0x2a   : > { %4242 = vmatprep.mubr.msk.bf16.mxu0 %vm5017_vm0, %v5016_v0  ;;  %4253 = vmatmul.mubr.msk.bf16.gmra.mrb[4].mxu1 %vm258_vm1, %v4917_v14  ;;  %v732_v57 = vsel %vm5160_vm6, %v727_v56, %v731_v51  ;;  %p4955_p13 = pneg %p4954_p12 }
  0x2b   : > { %4256 = vmatprep.mubr.msk.bf16.mxu1 %vm5017_vm0, %v5016_v0  ;;  %v3766_v58 = vcombine.low %v722_v55, %v732_v57  ;;  %p4961_p2 = por %p4960_p1, %p4959_p0 }
  0x2d   : > { %p4962_p3 = pnand %p4961_p2, %p4955_p13 }
  0x31   : > { %4243 = vmatmul.mubr.msk.bf16.gmra.mrb[8].mxu0 %vm258_vm1, %v4918_v15 }
  0x32   : > { %4257 = vmatmul.mubr.msk.bf16.gmra.mrb[8].mxu1 %vm258_vm1, %v4918_v15  ;;  %4262 = vmatprep.mubr.msk.bf16.mxu0 %vm5017_vm0, %v5016_v0 }
  0x33   : > { %4276 = vmatprep.mubr.msk.bf16.mxu1 %vm5017_vm0, %v5016_v0 }
  0x39   : > { %4263 = vmatmul.mubr.msk.bf16.vlgmr.msra.gmra.mrb[12].mxu0 %vm258_vm1, %v4916_v3 }
  0x3a   : > { %4266 = vmatprep.mubr.msk.bf16.mxu0 %vm5017_vm0, %v5016_v0  ;;  %4277 = vmatmul.mubr.msk.bf16.vlgmr.msra.gmra.mrb[12].mxu1 %vm258_vm1, %v4916_v3 }
  0x3b   : > { %4280 = vmatprep.mubr.msk.bf16.mxu1 %vm5017_vm0, %v5016_v0  ;;  %4289 = vmatpush3.bf16.msra.mxu1 %v4919_v17 }
  0x3c   : > { %4433 = vmatpush3.bf16.msra.mxu0 %v4920_v18  ;;  %4290 = vmatprep.subr.bf16.mxu1 %v4921_v44 }
  0x3d   : > { %4434 = vmatprep.subr.bf16.mxu0 %v4922_v45 }
  0x3f   : > { %4291 = vmatpush3.bf16.msra.mxu1 %v4921_v44 }
  0x40   : > { %4435 = vmatpush3.bf16.msra.mxu0 %v4922_v45  ;;  %4324 = vmatprep.subr.bf16.mxu1 %v4923_v59 }
  0x41   : > { %4267 = vmatmul.mubr.msk.bf16.gmra.mrb[16].mxu0 %vm258_vm1, %v4917_v14  ;;  %4468 = vmatprep.subr.bf16.mxu0 %v5179_v60 }
  0x42   : > { %4270 = vmatprep.mubr.msk.bf16.mxu0 %vm5017_vm0, %v5016_v0  ;;  %4281 = vmatmul.mubr.msk.bf16.gmra.mrb[16].mxu1 %vm258_vm1, %v4917_v14 }
  0x43   : > { %4284 = vmatprep.mubr.msk.bf16.mxu1 %vm5017_vm0, %v5016_v0 }
  0x49   : > { %4271 = vmatmul.mubr.msk.bf16.gmra.mrb[20].mxu0 %vm258_vm1, %v4918_v15 }
  0x4a   : > { %4285 = vmatmul.mubr.msk.bf16.gmra.mrb[20].mxu1 %vm258_vm1, %v4918_v15 }
  0x4b   : > { %4292 = vmatprep.mubr.msk.bf16.mxu1 %vm1106_vm7, %v3765_v54 }
  0x52   : > { %4293 = vmatmul.mubr.msk.bf16.vlgmr.msra.gmra.mrb[24].mxu1 %vm1106_vm7, %v3766_v58 }
  0x53   : > { %4325 = vmatpush3.bf16.msra.mxu1 %v4923_v59 }
  0x54   : > { %4326 = vmatprep.subr.bf16.mxu1 %v4926_v61 }
  0x57   : > { %4327 = vmatpush3.bf16.msra.mxu1 %v4926_v61 }
  0x58   : > { %4360 = vmatprep.subr.bf16.mxu1 %v5189_v62 }
  0xf4   : > { %v302_v63 = vpop.f32.mrb[0].mxu0 }
  0xf5   : > { %v4033_v0 = vpack.c.bf16 %v302_v63, %v302_v63  ;;  %v4236_v1 = vpop.f32.mrb[1].mxu0  ;;  %v394_v2 = vpop.f32.mrb[0].mxu1 }
  0xf6   : > { %v305_v3 = vpop.f32.mrb[2].mxu0  ;;  %v4038_v4 = vpack.c.bf16 %v394_v2, %v394_v2  ;;  %v4250_v5 = vpop.f32.mrb[1].mxu1 }
  0xf7   : > { %346 = vst.msk [vmem:[#allocation2 + $0x14] sm:$0xf] %vm229_vm2, %v4033_v0  ;;  %351 = vst.msk [vmem:[#allocation2 + $0x28] sm:$0xf] %vm229_vm2, %v4033_v0  ;;  %v4034_v6 = vpack.c.bf16 %v305_v3, %v305_v3  ;;  %v4237_v7 = vpop.f32.mrb[3].mxu0  ;;  %v397_v8 = vpop.f32.mrb[2].mxu1 }
  0xf8   : > { %438 = vst.msk [vmem:[#allocation2 + $0x3c] sm:$0xf] %vm229_vm2, %v4038_v4  ;;  %443 = vst.msk [vmem:[#allocation2 + $0x50] sm:$0xf] %vm229_vm2, %v4038_v4  ;;  %v4039_v9 = vpack.c.bf16 %v397_v8, %v397_v8  ;;  %v4251_v10 = vpop.f32.mrb[3].mxu1 }
  0xf9   : > { %347 = vst.msk [vmem:[#allocation2 + $0x18] sm:$0xf] %vm229_vm2, %v4034_v6  ;;  %352 = vst.msk [vmem:[#allocation2 + $0x2c] sm:$0xf] %vm229_vm2, %v4034_v6 }
  0xfa   : > { %439 = vst.msk [vmem:[#allocation2 + $0x40] sm:$0xf] %vm229_vm2, %v4039_v9  ;;  %444 = vst.msk [vmem:[#allocation2 + $0x54] sm:$0xf] %vm229_vm2, %v4039_v9 }
  0xfc   : > { %v310_v11 = vpop.f32.mrb[4].mxu0 }
  0xfd   : > { %v4035_v12 = vpack.c.bf16 %v310_v11, %v310_v11  ;;  %v4240_v13 = vpop.f32.mrb[5].mxu0  ;;  %v402_v14 = vpop.f32.mrb[4].mxu1 }
  0xfe   : > { %v313_v15 = vpop.f32.mrb[6].mxu0  ;;  %v4040_v16 = vpack.c.bf16 %v402_v14, %v402_v14  ;;  %v4254_v17 = vpop.f32.mrb[5].mxu1  ;;  %v5200_v18 = vld [vmem:[#allocation2 + $0x14] sm:$0xf]  ;;  %v5202_v19 = vld [vmem:[#allocation2 + $0x28] sm:$0xf] }
  0xff   : > { %348 = vst.msk [vmem:[#allocation2 + $0x1c] sm:$0xf] %vm229_vm2, %v4035_v12  ;;  %353 = vst.msk [vmem:[#allocation2 + $0x30] sm:$0xf] %vm229_vm2, %v4035_v12  ;;  %v4036_v20 = vpack.c.bf16 %v313_v15, %v313_v15  ;;  %v4241_v21 = vpop.f32.mrb[7].mxu0  ;;  %v405_v22 = vpop.f32.mrb[6].mxu1 }
 0x100   : > { %v734_v23 = vshrl.u32 %v5200_v18, 16  ;;  %v737_v24 = vshll.u32 %v5200_v18, 16  ;;  %v778_v25 = vshrl.u32 %v5202_v19, 16  ;;  %440 = vst.msk [vmem:[#allocation2 + $0x44] sm:$0xf] %vm229_vm2, %v4040_v16  ;;  %v4041_v26 = vpack.c.bf16 %v405_v22, %v405_v22  ;;  %v4255_v27 = vpop.f32.mrb[7].mxu1 }
 0x101   : > { %445 = vst.msk [vmem:[#allocation2 + $0x58] sm:$0xf] %vm229_vm2, %v4040_v16  ;;  %v5211_v28 = vld [vmem:[#allocation2 + $0x18] sm:$0xf]  ;;  %v5213_v29 = vld [vmem:[#allocation2 + $0x2c] sm:$0xf] }
 0x102   : > { %v781_v30 = vshll.u32 %v5202_v19, 16  ;;  %349 = vst.msk [vmem:[#allocation2 + $0x20] sm:$0xf] %vm229_vm2, %v4036_v20  ;;  %354 = vst.msk [vmem:[#allocation2 + $0x34] sm:$0xf] %vm229_vm2, %v4036_v20  ;;  %v736_v31 = vrot.slane %v734_v23, 4  ;;  %v5238_v1 = vcombine.low %v5200_v18, %v5211_v28  ;;  %v5242_v2 = vcombine.low %v5202_v19, %v5213_v29 }
 0x103   : > { %v739_v32 = vrot.slane %v737_v24, 5  ;;  %v743_v33 = vshll.u32 %v5211_v28, 16  ;;  %v747_v34 = vshrl.u32 %v5211_v28, 16  ;;  %v5220_v35 = vld [vmem:[#allocation2 + $0x3c] sm:$0xf]  ;;  %v780_v36 = vrot.slane %v778_v25, 4 }
 0x104   : > { %441 = vst.msk [vmem:[#allocation2 + $0x48] sm:$0xf] %vm229_vm2, %v4041_v26  ;;  %446 = vst.msk [vmem:[#allocation2 + $0x5c] sm:$0xf] %vm229_vm2, %v4041_v26  ;;  %v783_v37 = vrot.slane %v781_v30, 5  ;;  %v787_v38 = vshll.u32 %v5213_v29, 16 }
 0x105   : > { %v791_v39 = vshrl.u32 %v5213_v29, 16  ;;  %v740_v40 = vor.u32 %v739_v32, %v736_v31  ;;  %v745_v41 = vrot.slane %v743_v33, 5  ;;  %v749_v42 = vrot.slane %v747_v34, 4  ;;  %v318_v44 = vpop.f32.mrb[8].mxu0  ;;  %v410_v52 = vpop.f32.mrb[8].mxu1  ;;  %6350 = vst [vmem:[#allocation6_spill] sm:$0xff] %v5238_v1 }
 0x106   : > { %v822_v43 = vshrl.u32 %v5220_v35, 16  ;;  %v784_v45 = vor.u32 %v783_v37, %v780_v36  ;;  %v789_v46 = vrot.slane %v787_v38, 5  ;;  %v825_v49 = vshll.u32 %v5220_v35, 16  ;;  %v4244_v51 = vpop.f32.mrb[9].mxu0  ;;  %v5228_v55 = vld [vmem:[#allocation2 + $0x40] sm:$0xf] }
 0x107   : > { %v793_v47 = vrot.slane %v791_v39, 4  ;;  %v4037_v50 = vpack.c.bf16 %v318_v44, %v318_v44  ;;  %v741_v53 = vrot.slane %v740_v40, 4  ;;  %v750_v54 = vor.u32 %v749_v42, %v745_v41  ;;  %v321_v57 = vpop.f32.mrb[10].mxu0  ;;  %v5232_v59 = vld [vmem:[#allocation2 + $0x1c] sm:$0xf]  ;;  %v4258_v61 = vpop.f32.mrb[9].mxu1 }
 0x108   : > { %v5230_v56 = vrot.slane %v822_v43, 4  ;;  %v4042_v58 = vpack.c.bf16 %v410_v52, %v410_v52  ;;  %v5234_v63 = vld [vmem:[#allocation2 + $0x30] sm:$0xf]  ;;  %v4245_v3 = vpop.f32.mrb[11].mxu0  ;;  %v753_v6 = vshll.u32 %v5232_v59, 16  ;;  %v413_v7 = vpop.f32.mrb[10].mxu1  ;;  %v5257_v14 = vcombine.low %v5220_v35, %v5228_v55 }
 0x109   : > { %v794_v0 = vor.u32 %v793_v47, %v789_v46  ;;  %350 = vst.msk [vmem:[#allocation2 + $0x24] sm:$0x1] %vm234_vm3, %v4037_v50  ;;  %355 = vst.msk [vmem:[#allocation2 + $0x38] sm:$0x1] %vm234_vm3, %v4037_v50  ;;  %v746_v4 = vsel %vm5160_vm6, %v741_v53, %v745_v41  ;;  %v751_v5 = vrot.slane %v750_v54, 4  ;;  %v757_v8 = vshrl.u32 %v5232_v59, 16 }
 0x10a   : > { %442 = vst.msk [vmem:[#allocation2 + $0x4c] sm:$0x1] %vm234_vm3, %v4042_v58  ;;  %447 = vst.msk [vmem:[#allocation2 + $0x60] sm:$0x1] %vm234_vm3, %v4042_v58  ;;  %v4259_v9 = vpop.f32.mrb[11].mxu1  ;;  %v785_v11 = vrot.slane %v784_v45, 4 }
 0x10b   : > { %v5252_v10 = vld [vmem:[#allocation2 + $0x20] sm:$0xf]  ;;  %v795_v12 = vrot.slane %v794_v0, 4  ;;  %v797_v13 = vshll.u32 %v5234_v63, 16  ;;  %v755_v15 = vrot.slane %v753_v6, 5  ;;  %v759_v16 = vrot.slane %v757_v8, 4 }
 0x10c   : > { %v763_v17 = vshll.u32 %v5252_v10, 16  ;;  %v767_v20 = vshrl.u32 %v5252_v10, 16  ;;  %v5261_v21 = vld [vmem:[#allocation2 + $0x34] sm:$0xf]  ;;  %v1649_v22 = vrot.slane %v5252_v10, 5  ;;  %v790_v23 = vsel %vm5160_vm6, %v785_v11, %v789_v46  ;;  %v486_v33 = vpop.f32.mrb[12].mxu0 }
 0x10d   : > { %v799_v24 = vrot.slane %v797_v13, 5  ;;  %v801_v25 = vshrl.u32 %v5234_v63, 16  ;;  %v756_v26 = vsel %vm5160_vm6, %v751_v5, %v755_v15  ;;  %v760_v27 = vor.u32 %v759_v16, %v755_v15  ;;  %v4264_v41 = vpop.f32.mrb[13].mxu0  ;;  %v578_v43 = vpop.f32.mrb[12].mxu1  ;;  %v5292_v0 = vld [vmem:[#allocation2 + $0x44] sm:$0xf] }
 0x10e   : > { %v765_v30 = vrot.slane %v763_v17, 5  ;;  %v769_v31 = vrot.slane %v767_v20, 4  ;;  %v3767_v32 = vcombine.low %v746_v4, %v756_v26  ;;  %v807_v37 = vshll.u32 %v5261_v21, 16  ;;  %v489_v45 = vpop.f32.mrb[14].mxu0  ;;  %v4278_v7 = vpop.f32.mrb[13].mxu1 }
 0x10f   : > { %v800_v34 = vsel %vm5160_vm6, %v795_v12, %v799_v24  ;;  %v803_v36 = vrot.slane %v801_v25, 4  ;;  %v4043_v38 = vpack.c.bf16 %v486_v33, %v486_v33  ;;  %v761_v39 = vrot.slane %v760_v27, 4  ;;  %v4265_v61 = vpop.f32.mrb[15].mxu0  ;;  %v5304_v13 = vpop.f32.mrb[14].mxu1  ;;  %v5341_v7 = vld [vmem:[#allocation2 + $0x54] sm:$0xf] }
 0x110   : > { %v770_v40 = vor.u32 %v769_v31, %v765_v30  ;;  %v5272_v42 = vcombine.low %v790_v23, %v800_v34  ;;  %4296 = vmatprep.mubr.msk.bf16.mxu1 %vm1106_vm7, %v3767_v32  ;;  %4436 = vmatprep.mubr.msk.bf16.mxu0 %vm1106_vm7, %v3767_v32  ;;  %v5276_v44 = vld [vmem:[#allocation2 + $0x24] sm:$0x1]  ;;  %v5278_v46 = vld [vmem:[#allocation2 + $0x38] sm:$0x1]  ;;  %v5280_v50 = vrot.slane %v807_v37, 5  ;;  %v4048_v51 = vpack.c.bf16 %v578_v43, %v578_v43  ;;  %v4279_v23 = vpop.f32.mrb[15].mxu1 }
 0x111   : > { %v804_v47 = vor.u32 %v803_v36, %v799_v24  ;;  %v5284_v52 = vcombine.low %v5232_v59, %v5252_v10  ;;  %530 = vst.msk [vmem:[#allocation2 + $0x64] sm:$0xf] %vm229_vm2, %v4043_v38  ;;  %535 = vst.msk [vmem:[#allocation2 + $0x78] sm:$0xf] %vm229_vm2, %v4043_v38  ;;  %v766_v53 = vsel %vm5160_vm6, %v761_v39, %v765_v30  ;;  %v773_v57 = vshll.u32 %v5276_v44, 16  ;;  %v4925_v36 = vld [vmem:[%s6315_s2 + $0x58] sm:$0xff]  }
 0x112   : > { %v771_v54 = vrot.slane %v770_v40, 4  ;;  %v1652_v58 = vrot.slane %v5276_v44, 5  ;;  %v4044_v3 = vpack.c.bf16 %v489_v45, %v489_v45  ;;  %v811_v5 = vshrl.u32 %v5261_v21, 16  ;;  %622 = vst.msk [vmem:[#allocation2 + $0x8c] sm:$0xf] %vm229_vm2, %v4048_v51  ;;  %v5354_v23 = vld [vmem:[%s6315_s2 + $0x60] sm:$0xff]  }
 0x113   : > { %6351 = vst [vmem:[#allocation7_spill] sm:$0xff] %v5284_v52  ;;  %v5294_v4 = vrot.slane %v804_v47, 4  ;;  %v817_v6 = vshll.u32 %v5278_v46, 16  ;;  %627 = vst.msk [vmem:[#allocation2 + $0xa0] sm:$0xf] %vm229_vm2, %v4048_v51  ;;  %v775_v8 = vrot.slane %v773_v57, 5 }
 0x114   : > { %v827_v9 = vrot.slane %v825_v49, 5  ;;  %v831_v11 = vshll.u32 %v5228_v55, 16  ;;  %v835_v12 = vshrl.u32 %v5228_v55, 16  ;;  %531 = vst.msk [vmem:[#allocation2 + $0x68] sm:$0xf] %vm229_vm2, %v4044_v3  ;;  %v813_v16 = vrot.slane %v811_v5, 4 }
 0x115   : > { %536 = vst.msk [vmem:[#allocation2 + $0x7c] sm:$0xf] %vm229_vm2, %v4044_v3  ;;  %v810_v15 = vsel %vm5160_vm6, %v5294_v4, %v5280_v50  ;;  %v819_v17 = vrot.slane %v817_v6, 5  ;;  %v841_v20 = vshll.u32 %v5292_v0, 16  ;;  %v5313_v49 = vld [vmem:[#allocation2 + $0x48] sm:$0xf]  ;;  %v776_v24 = vsel %vm5160_vm6, %v771_v54, %v775_v8 }
 0x116   : > { %v828_v25 = vor.u32 %v827_v9, %v5230_v56  ;;  %v833_v26 = vrot.slane %v831_v11, 5  ;;  %v837_v27 = vrot.slane %v835_v12, 4  ;;  %v5318_v30 = vld [vmem:[#allocation2 + $0x4c] sm:$0x1]  ;;  %v3768_v31 = vcombine.low %v766_v53, %v776_v24  ;;  %v494_v32 = vpop.f32.mrb[16].mxu0  ;;  %v5328_v45 = vpop.f32.mrb[16].mxu1 }
 0x117   : > { %v814_v33 = vor.u32 %v813_v16, %v5280_v50  ;;  %v843_v34 = vrot.slane %v841_v20, 5  ;;  %v845_v37 = vshrl.u32 %v5292_v0, 16  ;;  %v4045_v38 = vpack.c.bf16 %v494_v32, %v494_v32  ;;  %v4268_v39 = vpop.f32.mrb[17].mxu0  ;;  %v5326_v43 = vld [vmem:[#allocation2 + $0x50] sm:$0xf]  ;;  %v4282_v57 = vpop.f32.mrb[17].mxu1 }
 0x118   : > { %v829_v40 = vrot.slane %v828_v25, 4  ;;  %v838_v41 = vor.u32 %v837_v27, %v833_v26  ;;  %v851_v56 = vshll.u32 %v5313_v49, 16  ;;  %4297 = vmatmul.mubr.msk.bf16.gmra.mrb[28].mxu1 %vm1106_vm7, %v3768_v31  ;;  %4437 = vmatmul.mubr.msk.bf16.vlgmr.msra.gmra.mrb[24].mxu0 %vm1106_vm7, %v3768_v31  ;;  %v497_v50 = vpop.f32.mrb[18].mxu0  ;;  %v855_v53 = vshrl.u32 %v5313_v49, 16  ;;  %v5343_v8 = vpop.f32.mrb[18].mxu1 }
 0x119   : > { %v815_v47 = vrot.slane %v814_v33, 4  ;;  %v847_v51 = vrot.slane %v845_v37, 4  ;;  %v861_v54 = vshll.u32 %v5318_v30, 16  ;;  %4469 = vmatpush3.bf16.msra.mxu0 %v5179_v60  ;;  %4300 = vmatprep.mubr.msk.bf16.mxu1 %vm1106_vm7, %v5272_v42  ;;  %532 = vst.msk [vmem:[#allocation2 + $0x6c] sm:$0xf] %vm229_vm2, %v4045_v38  ;;  %v4046_v4 = vpack.c.bf16 %v497_v50, %v497_v50  ;;  %v4269_v5 = vpop.f32.mrb[19].mxu0 }
 0x11a   : > { %537 = vst.msk [vmem:[#allocation2 + $0x80] sm:$0xf] %vm229_vm2, %v4045_v38  ;;  %v834_v61 = vsel %vm5160_vm6, %v829_v40, %v833_v26  ;;  %v839_v3 = vrot.slane %v838_v41, 4  ;;  %v853_v6 = vrot.slane %v851_v56, 5  ;;  %4440 = vmatprep.mubr.msk.bf16.mxu0 %vm1106_vm7, %v5272_v42  ;;  %4470 = vmatprep.subr.bf16.mxu0 %v4925_v36  ;;  %v857_v11 = vrot.slane %v855_v53, 4  ;;  %v4283_v20 = vpop.f32.mrb[19].mxu1 }
 0x11b   : > { %v820_v60 = vsel %vm5160_vm6, %v815_v47, %v819_v17  ;;  %v848_v9 = vor.u32 %v847_v51, %v843_v34  ;;  %v863_v12 = vrot.slane %v861_v54, 5  ;;  %v5349_v16 = vld [vmem:[#allocation2 + $0x58] sm:$0xf]  ;;  %533 = vst.msk [vmem:[#allocation2 + $0x70] sm:$0xf] %vm229_vm2, %v4046_v4  ;;  %v866_v17 = vshrl.u32 %v5326_v43, 16 }
 0x11c   : > { %v5356_v24 = vcombine.low %v810_v15, %v820_v60  ;;  %v844_v25 = vsel %vm5160_vm6, %v839_v3, %v843_v34  ;;  %538 = vst.msk [vmem:[#allocation2 + $0x84] sm:$0xf] %vm229_vm2, %v4046_v4  ;;  %v869_v26 = vshll.u32 %v5326_v43, 16  ;;  %v858_v32 = vor.u32 %v857_v11, %v853_v6  ;;  %v5369_v39 = vld [vmem:[#allocation2 + $0x5c] sm:$0xf]  ;;  %v502_v40 = vpop.f32.mrb[20].mxu0 }
 0x11d   : > { %v5364_v27 = vcombine.low %v834_v61, %v844_v25  ;;  %v849_v31 = vrot.slane %v848_v9, 4  ;;  %v875_v33 = vshll.u32 %v5341_v7, 16  ;;  %4471 = vmatpush3.bf16.msra.mxu0 %v4925_v36  ;;  %v868_v15 = vrot.slane %v866_v17, 4  ;;  %v5375_v51 = vld [vmem:[#allocation2 + $0x60] sm:$0x1]  ;;  %v4272_v61 = vpop.f32.mrb[21].mxu0 }
 0x11e   : > { %6352 = vst [vmem:[#allocation8_spill] sm:$0xff] %v5356_v24  ;;  %v871_v37 = vrot.slane %v869_v26, 5  ;;  %v879_v34 = vshrl.u32 %v5341_v7, 16  ;;  %v885_v38 = vshll.u32 %v5349_v16, 16  ;;  %v859_v56 = vrot.slane %v858_v32, 4  ;;  %4504 = vmatprep.subr.bf16.mxu0 %v5354_v23  ;;  %v5380_v4 = vpop.f32.mrb[20].mxu1 }
 0x11f   : > { %6353 = vst [vmem:[#allocation9_spill] sm:$0xff] %v5364_v27  ;;  %v854_v41 = vsel %vm5160_vm6, %v849_v31, %v853_v6  ;;  %v877_v47 = vrot.slane %v875_v33, 5  ;;  %v4049_v50 = vpack.c.bf16 %v5304_v13, %v5304_v13  ;;  %v4047_v36 = vpack.c.bf16 %v502_v40, %v502_v40  ;;  %v5378_v3 = vld [vmem:[#allocation2 + $0x64] sm:$0xf]  ;;  %v505_v5 = vpop.f32.mrb[22].mxu0  ;;  %v4286_v11 = vpop.f32.mrb[21].mxu1 }
 0x120   : > { %v872_v53 = vor.u32 %v871_v37, %v868_v15  ;;  %v881_v54 = vrot.slane %v879_v34, 4  ;;  %v887_v57 = vrot.slane %v885_v38, 5  ;;  %4301 = vmatmul.mubr.msk.bf16.gmra.mrb[32].mxu1 %vm1106_vm7, %v5356_v24  ;;  %4441 = vmatmul.mubr.msk.bf16.gmra.mrb[28].mxu0 %vm1106_vm7, %v5356_v24  ;;  %v864_v13 = vsel %vm5160_vm6, %v859_v56, %v863_v12  ;;  %v5403_v26 = vld [vmem:[#allocation2 + $0x68] sm:$0xf]  ;;  %v597_v31 = vpop.f32.mrb[22].mxu1 }
 0x121   : > { %623 = vst.msk [vmem:[#allocation2 + $0x90] sm:$0xf] %vm229_vm2, %v4049_v50  ;;  %628 = vst.msk [vmem:[#allocation2 + $0xa4] sm:$0xf] %vm229_vm2, %v4049_v50  ;;  %v4050_v6 = vpack.c.bf16 %v5328_v45, %v5328_v45  ;;  %v889_v60 = vshrl.u32 %v5349_v16, 16  ;;  %v895_v9 = vshll.u32 %v5369_v39, 16  ;;  %4304 = vmatprep.mubr.msk.bf16.mxu1 %vm1106_vm7, %v5364_v27  ;;  %4444 = vmatprep.mubr.msk.bf16.mxu0 %vm1106_vm7, %v5364_v27 }
 0x122   : > { %534 = vst.msk [vmem:[#allocation2 + $0x74] sm:$0x1] %vm234_vm3, %v4047_v36  ;;  %539 = vst.msk [vmem:[#allocation2 + $0x88] sm:$0x1] %vm234_vm3, %v4047_v36  ;;  %v5400_v12 = vcombine.low %v854_v41, %v864_v13  ;;  %v873_v20 = vrot.slane %v872_v53, 4  ;;  %v882_v25 = vor.u32 %v881_v54, %v877_v47  ;;  %v4273_v45 = vpop.f32.mrb[23].mxu0 }
 0x123   : > { %v899_v17 = vshrl.u32 %v5369_v39, 16  ;;  %624 = vst.msk [vmem:[#allocation2 + $0x94] sm:$0xf] %vm229_vm2, %v4050_v6  ;;  %629 = vst.msk [vmem:[#allocation2 + $0xa8] sm:$0xf] %vm229_vm2, %v4050_v6  ;;  %v891_v32 = vrot.slane %v889_v60, 4 }
 0x124   : > { %6354 = vst [vmem:[#allocation10_spill] sm:$0xff] %v5400_v12  ;;  %v897_v33 = vrot.slane %v895_v9, 5  ;;  %v905_v15 = vshll.u32 %v5375_v51, 16  ;;  %v910_v37 = vshrl.u32 %v5378_v3, 16  ;;  %v878_v34 = vsel %vm5160_vm6, %v873_v20, %v877_v47  ;;  %v5411_v41 = vld [vmem:[#allocation2 + $0x6c] sm:$0xf] }
 0x125   : > { %v883_v38 = vrot.slane %v882_v25, 4  ;;  %v901_v40 = vrot.slane %v899_v17, 4  ;;  %v913_v56 = vshll.u32 %v5378_v3, 16  ;;  %v4287_v50 = vpop.f32.mrb[23].mxu1  ;;  %v892_v36 = vor.u32 %v891_v32, %v887_v57 }
 0x126   : > { %v907_v53 = vrot.slane %v905_v15, 5  ;;  %v912_v54 = vrot.slane %v910_v37, 4  ;;  %v919_v61 = vshll.u32 %v5403_v26, 16  ;;  %v923_v60 = vshrl.u32 %v5403_v26, 16 }
 0x127   : > { %v888_v13 = vsel %vm5160_vm6, %v883_v38, %v887_v57  ;;  %v902_v5 = vor.u32 %v901_v40, %v897_v33  ;;  %v915_v6 = vrot.slane %v913_v56, 5  ;;  %v893_v9 = vrot.slane %v892_v36, 4 }
 0x128   : > { %v5418_v47 = vcombine.low %v878_v34, %v888_v13  ;;  %v921_v11 = vrot.slane %v919_v61, 5  ;;  %v929_v20 = vshll.u32 %v5411_v41, 16  ;;  %v925_v17 = vrot.slane %v923_v60, 4  ;;  %4305 = vmatmul.mubr.msk.bf16.gmra.mrb[36].mxu1 %vm1106_vm7, %v5400_v12  ;;  %4445 = vmatmul.mubr.msk.bf16.gmra.mrb[32].mxu0 %vm1106_vm7, %v5400_v12 }
 0x129   : > { %v903_v25 = vrot.slane %v902_v5, 4  ;;  %v916_v45 = vor.u32 %v915_v6, %v912_v54  ;;  %v3834_v57 = vrot.slane %v5200_v18, 9  ;;  %v898_v32 = vsel %vm5160_vm6, %v893_v9, %v897_v33  ;;  %v5444_v33 = vld [vmem:[#allocation2 + $0x70] sm:$0xf]  ;;  %v5446_v50 = vld [vmem:[#allocation2 + $0x74] sm:$0x1] }
 0x12a   : > { %6355 = vst [vmem:[#allocation11_spill] sm:$0xff] %v5418_v47  ;;  %v931_v15 = vrot.slane %v929_v20, 5  ;;  %v1643_v37 = vrot.slane %v5211_v28, 5  ;;  %v1646_v34 = vrot.slane %v5232_v59, 5  ;;  %4308 = vmatprep.mubr.msk.bf16.mxu1 %vm1106_vm7, %v5418_v47  ;;  %4448 = vmatprep.mubr.msk.bf16.mxu0 %vm1106_vm7, %v5418_v47  ;;  %v926_v40 = vor.u32 %v925_v17, %v921_v11  ;;  %v5476_v17 = vld [vmem:[#allocation2 + $0x7c] sm:$0xf] }
 0x12b   : > { %v908_v18 = vsel %vm5160_vm6, %v903_v25, %v907_v53  ;;  %v917_v38 = vrot.slane %v916_v45, 4  ;;  %v4051_v56 = vpack.c.bf16 %v5343_v8, %v5343_v8  ;;  %v4052_v8 = vpack.c.bf16 %v5380_v4, %v5380_v4 }
 0x12c   : > { %v5448_v28 = vcombine.low %v898_v32, %v908_v18  ;;  %v1644_v59 = vsel %vm5423_vm10, %v3834_v57, %v1643_v37  ;;  %v1645_v36 = vrot.slane %v1643_v37, 4  ;;  %v1648_v54 = vrot.slane %v1646_v34, 4  ;;  %v5478_v57 = vld [vmem:[#allocation2 + $0x80] sm:$0xf] }
 0x12d   : > { %v922_v61 = vsel %vm5160_vm6, %v917_v38, %v921_v11  ;;  %v927_v53 = vrot.slane %v926_v40, 4  ;;  %625 = vst.msk [vmem:[#allocation2 + $0x98] sm:$0xf] %vm229_vm2, %v4051_v56  ;;  %630 = vst.msk [vmem:[#allocation2 + $0xac] sm:$0xf] %vm229_vm2, %v4051_v56  ;;  %v933_v13 = vshrl.u32 %v5411_v41, 16 }
 0x12e   : > { %6358 = vst [vmem:[#allocation12_spill] sm:$0xff] %v5448_v28  ;;  %v1647_v5 = vsel %vm5423_vm10, %v1645_v36, %v1646_v34  ;;  %v939_v6 = vshll.u32 %v5444_v33, 16  ;;  %v943_v60 = vshrl.u32 %v5444_v33, 16  ;;  %v949_v9 = vshll.u32 %v5446_v50, 16  ;;  %v5464_v11 = vld [vmem:[#allocation2 + $0x78] sm:$0xf] }
 0x12f   : > { %v932_v20 = vsel %vm5160_vm6, %v927_v53, %v931_v15  ;;  %v5468_v25 = vcombine.low %v1644_v59, %v1647_v5  ;;  %626 = vst.msk [vmem:[#allocation2 + $0x9c] sm:$0x1] %vm234_vm3, %v4052_v8  ;;  %631 = vst.msk [vmem:[#allocation2 + $0xb0] sm:$0x1] %vm234_vm3, %v4052_v8  ;;  %v935_v4 = vrot.slane %v933_v13, 4  ;;  %v1650_v45 = vsel %vm5423_vm10, %v1648_v54, %v1649_v22 }
 0x130   : > { %v5480_v32 = vcombine.low %v922_v61, %v932_v20  ;;  %v941_v37 = vrot.slane %v939_v6, 5  ;;  %v945_v34 = vrot.slane %v943_v60, 4  ;;  %v951_v18 = vrot.slane %v949_v9, 5  ;;  %4309 = vmatmul.mubr.msk.bf16.gmra.mrb[40].mxu1 %vm1106_vm7, %v5448_v28  ;;  %4449 = vmatmul.mubr.msk.bf16.gmra.mrb[36].mxu0 %vm1106_vm7, %v5448_v28  ;;  %v5503_v9 = vld [vmem:[#allocation2 + $0x84] sm:$0xf] }
 0x131   : > { %v936_v38 = vor.u32 %v935_v4, %v931_v15  ;;  %v1651_v40 = vrot.slane %v1649_v22, 4  ;;  %v954_v56 = vshrl.u32 %v5464_v11, 16  ;;  %v957_v59 = vshll.u32 %v5464_v11, 16  ;;  %4472 = vmatprep.mubr.msk.bf16.mxu0 %vm1106_vm7, %v5468_v25 }
 0x132   : > { %6359 = vst [vmem:[#allocation13_spill] sm:$0xff] %v5480_v32  ;;  %v946_v36 = vor.u32 %v945_v34, %v941_v37  ;;  %v963_v54 = vshll.u32 %v5476_v17, 16  ;;  %v967_v61 = vshrl.u32 %v5476_v17, 16  ;;  %v973_v15 = vshll.u32 %v5478_v57, 16  ;;  %4312 = vmatprep.mubr.msk.bf16.mxu1 %vm1106_vm7, %v5480_v32 }
 0x133   : > { %v937_v10 = vrot.slane %v936_v38, 4  ;;  %v1653_v22 = vsel %vm5423_vm10, %v1651_v40, %v1652_v58  ;;  %v956_v53 = vrot.slane %v954_v56, 4  ;;  %v959_v8 = vrot.slane %v957_v59, 5  ;;  %v5512_v56 = vld [vmem:[#allocation2 + $0x88] sm:$0x1] }
 0x134   : > { %v947_v13 = vrot.slane %v946_v36, 4  ;;  %v5501_v5 = vcombine.low %v1650_v45, %v1653_v22  ;;  %v965_v6 = vrot.slane %v963_v54, 5  ;;  %v969_v60 = vrot.slane %v967_v61, 4 }
 0x135   : > { %v942_v20 = vsel %vm5160_vm6, %v937_v10, %v941_v37  ;;  %v960_v4 = vor.u32 %v959_v8, %v956_v53  ;;  %v975_v34 = vrot.slane %v973_v15, 5  ;;  %v3835_v38 = vrot.slane %v5202_v19, 9 }
 0x136   : > { %v952_v44 = vsel %vm5160_vm6, %v947_v13, %v951_v18  ;;  %v970_v58 = vor.u32 %v969_v60, %v965_v6  ;;  %v1656_v40 = vrot.slane %v5213_v29, 5  ;;  %v1659_v45 = vrot.slane %v5234_v63, 5  ;;  %v4929_v29 = vld [vmem:[%s6315_s2 + $0x68] sm:$0xff]  }
 0x137   : > { %v5514_v59 = vcombine.low %v942_v20, %v952_v44  ;;  %v961_v36 = vrot.slane %v960_v4, 4  ;;  %v977_v54 = vshrl.u32 %v5478_v57, 16  ;;  %v983_v37 = vshll.u32 %v5503_v9, 16  ;;  %v5527_v13 = vld [vmem:[#allocation2 + $0x8c] sm:$0xf] }
 0x138   : > { %v971_v61 = vrot.slane %v970_v58, 4  ;;  %v1657_v19 = vsel %vm5423_vm10, %v3835_v38, %v1656_v40  ;;  %v1658_v15 = vrot.slane %v1656_v40, 4  ;;  %v987_v18 = vshrl.u32 %v5503_v9, 16  ;;  %4473 = vmatmul.mubr.msk.bf16.vlgmr.msra.gmra.mrb[24].mxu0 %vm1106_vm7, %v5501_v5  ;;  %v5537_v38 = vld [vmem:[#allocation2 + $0x90] sm:$0xf] }
 0x139   : > { %6360 = vst [vmem:[#allocation14_spill] sm:$0xff] %v5514_v59  ;;  %v966_v10 = vsel %vm5160_vm6, %v961_v36, %v965_v6  ;;  %v979_v22 = vrot.slane %v977_v54, 4  ;;  %v985_v53 = vrot.slane %v983_v37, 5  ;;  %v993_v8 = vshll.u32 %v5512_v56, 16  ;;  %4313 = vmatmul.mubr.msk.bf16.gmra.mrb[44].mxu1 %vm1106_vm7, %v5514_v59  ;;  %4505 = vmatpush3.bf16.msra.mxu0 %v5354_v23 }
 0x13a   : > { %v976_v60 = vsel %vm5160_vm6, %v971_v61, %v975_v34  ;;  %v1660_v20 = vsel %vm5423_vm10, %v1658_v15, %v1659_v45  ;;  %v989_v4 = vrot.slane %v987_v18, 4  ;;  %v1661_v6 = vrot.slane %v1659_v45, 4  ;;  %4506 = vmatprep.subr.bf16.mxu0 %v4929_v29  ;;  %v5550_v45 = vld [vmem:[%s6315_s2 + $0x70] sm:$0xff]  }
 0x13b   : > { %v5540_v44 = vcombine.low %v966_v10, %v976_v60  ;;  %v5542_v58 = vcombine.low %v1657_v19, %v1660_v20  ;;  %v980_v40 = vor.u32 %v979_v22, %v975_v34  ;;  %v995_v36 = vrot.slane %v993_v8, 5  ;;  %v5556_v34 = vld [vmem:[#allocation2 + $0x94] sm:$0xf] }
 0x13c   : > { %v990_v54 = vor.u32 %v989_v4, %v985_v53  ;;  %v1662_v37 = vrot.slane %v5261_v21, 5  ;;  %v1665_v61 = vrot.slane %v5278_v46, 5  ;;  %v998_v59 = vshrl.u32 %v5527_v13, 16 }
 0x13d   : > { %6361 = vst [vmem:[#allocation15_spill] sm:$0xff] %v5540_v44  ;;  %4316 = vmatprep.mubr.msk.bf16.mxu1 %vm1106_vm7, %v5540_v44  ;;  %4476 = vmatprep.mubr.msk.bf16.mxu0 %vm1106_vm7, %v5542_v58  ;;  %v981_v23 = vrot.slane %v980_v40, 4  ;;  %v1001_v19 = vshll.u32 %v5527_v13, 16  ;;  %v1007_v46 = vshll.u32 %v5537_v38, 16  ;;  %v1011_v15 = vshrl.u32 %v5537_v38, 16 }
 0x13e   : > { %v991_v18 = vrot.slane %v990_v54, 4  ;;  %v1663_v10 = vsel %vm5423_vm10, %v1661_v6, %v1662_v37  ;;  %v1664_v22 = vrot.slane %v1662_v37, 4  ;;  %v1000_v8 = vrot.slane %v998_v59, 4  ;;  %4507 = vmatpush3.bf16.msra.mxu0 %v4929_v29  ;;  %v5571_v6 = vld [vmem:[#allocation2 + $0x98] sm:$0xf] }
 0x13f   : > { %v986_v60 = vsel %vm5160_vm6, %v981_v23, %v985_v53  ;;  %v1003_v20 = vrot.slane %v1001_v19, 5  ;;  %v1009_v4 = vrot.slane %v1007_v46, 5  ;;  %v1013_v40 = vrot.slane %v1011_v15, 4  ;;  %4540 = vmatprep.subr.bf16.mxu0 %v5550_v45  ;;  %v5578_v23 = vld [vmem:[#allocation2 + $0x9c] sm:$0x1] }
 0x140   : > { %v996_v44 = vsel %vm5160_vm6, %v991_v18, %v995_v36  ;;  %v1666_v32 = vsel %vm5423_vm10, %v1664_v22, %v1665_v61  ;;  %v1017_v54 = vshll.u32 %v5556_v34, 16  ;;  %v3836_v28 = vrot.slane %v5220_v35, 9 }
 0x141   : > { %v5574_v59 = vcombine.low %v986_v60, %v996_v44  ;;  %v5576_v53 = vcombine.low %v1663_v10, %v1666_v32  ;;  %v1004_v37 = vor.u32 %v1003_v20, %v1000_v8  ;;  %v1014_v29 = vor.u32 %v1013_v40, %v1009_v4 }
 0x142   : > { %v1019_v36 = vrot.slane %v1017_v54, 5  ;;  %v1669_v19 = vrot.slane %v5228_v55, 5  ;;  %v1672_v61 = vrot.slane %v5292_v0, 5  ;;  %v1021_v46 = vshrl.u32 %v5556_v34, 16 }
 0x143   : > { %6362 = vst [vmem:[#allocation16_spill] sm:$0xff] %v5574_v59  ;;  %4317 = vmatmul.mubr.msk.bf16.gmra.mrb[48].mxu1 %vm1106_vm7, %v5574_v59  ;;  %4477 = vmatmul.mubr.msk.bf16.gmra.mrb[28].mxu0 %vm1106_vm7, %v5576_v53  ;;  %v1005_v35 = vrot.slane %v1004_v37, 4  ;;  %v1015_v32 = vrot.slane %v1014_v29, 4  ;;  %v1027_v44 = vshll.u32 %v5571_v6, 16  ;;  %v1031_v15 = vshrl.u32 %v5571_v6, 16 }
 0x144   : > { %v1670_v18 = vsel %vm5423_vm10, %v3836_v28, %v1669_v19  ;;  %v1671_v55 = vrot.slane %v1669_v19, 4  ;;  %v1023_v10 = vrot.slane %v1021_v46, 4  ;;  %v1037_v22 = vshll.u32 %v5578_v23, 16 }
 0x145   : > { %v1010_v8 = vsel %vm5160_vm6, %v1005_v35, %v1009_v4  ;;  %v1020_v60 = vsel %vm5160_vm6, %v1015_v32, %v1019_v36  ;;  %v1029_v20 = vrot.slane %v1027_v44, 5  ;;  %v1033_v40 = vrot.slane %v1031_v15, 4 }
 0x146   : > { %v5596_v54 = vcombine.low %v1010_v8, %v1020_v60  ;;  %v1673_v37 = vsel %vm5423_vm10, %v1671_v55, %v1672_v61  ;;  %v1024_v29 = vor.u32 %v1023_v10, %v1019_v36  ;;  %v1039_v59 = vrot.slane %v1037_v22, 5 }
 0x147   : > { %v5600_v28 = vcombine.low %v1670_v18, %v1673_v37  ;;  %v1034_v19 = vor.u32 %v1033_v40, %v1029_v20  ;;  %v1674_v46 = vrot.slane %v1672_v61, 4  ;;  %v1675_v47 = vrot.slane %v5313_v49, 5  ;;  %v5622_v40 = vld [vmem:[#allocation2] sm:$0xf] }
 0x148   : > { %6363 = vst [vmem:[#allocation17_spill] sm:$0xff] %v5596_v54  ;;  %4320 = vmatprep.mubr.msk.bf16.mxu1 %vm1106_vm7, %v5596_v54  ;;  %v1025_v4 = vrot.slane %v1024_v29, 4  ;;  %v1678_v35 = vrot.slane %v5318_v30, 5  ;;  %v3837_v32 = vrot.slane %v5326_v43, 9  ;;  %v1682_v44 = vrot.slane %v5341_v7, 5 }
 0x149   : > { %4480 = vmatprep.mubr.msk.bf16.mxu0 %vm1106_vm7, %v5600_v28  ;;  %v1035_v36 = vrot.slane %v1034_v19, 4  ;;  %v1676_v15 = vsel %vm5423_vm10, %v1674_v46, %v1675_v47  ;;  %v1677_v61 = vrot.slane %v1675_v47, 4  ;;  %v1685_v18 = vrot.slane %v5349_v16, 5  ;;  %v5624_v47 = vld [vmem:[#allocation2 + $0x4] sm:$0xf] }
 0x14a   : > { %v1030_v55 = vsel %vm5160_vm6, %v1025_v4, %v1029_v20  ;;  %v1683_v30 = vsel %vm5423_vm10, %v3837_v32, %v1682_v44  ;;  %v1684_v10 = vrot.slane %v1682_v44, 4  ;;  %v1688_v22 = vrot.slane %v5369_v39, 5 }
 0x14b   : > { %v1040_v8 = vsel %vm5160_vm6, %v1035_v36, %v1039_v59  ;;  %v1679_v60 = vsel %vm5423_vm10, %v1677_v61, %v1678_v35  ;;  %v3799_v37 = vcombine.low %v5622_v40, %v5624_v47  ;;  %v1687_v46 = vrot.slane %v1685_v18, 4 }
 0x14c   : > { %v5628_v20 = vcombine.low %v1030_v55, %v1040_v8  ;;  %v5630_v29 = vcombine.low %v1676_v15, %v1679_v60  ;;  %v1686_v19 = vsel %vm5423_vm10, %v1684_v10, %v1685_v18  ;;  %v1690_v59 = vrot.slane %v1688_v22, 4  ;;  %v5652_v55 = vld [vmem:[#allocation2 + $0x8] sm:$0xf] }
 0x14d   : > { %v5634_v4 = vcombine.low %v1683_v30, %v1686_v19  ;;  %v1691_v35 = vrot.slane %v5375_v51, 5  ;;  %v1695_v32 = vrot.slane %v5403_v26, 5  ;;  %v3838_v44 = vrot.slane %v5378_v3, 9  ;;  %v5654_v30 = vld [vmem:[#allocation2 + $0xc] sm:$0xf] }
 0x14e   : > { %6364 = vst [vmem:[#allocation18_spill] sm:$0xff] %v5628_v20  ;;  %4321 = vmatmul.mubr.msk.bf16.gmra.mrb[52].mxu1 %vm1106_vm7, %v5628_v20  ;;  %4481 = vmatmul.mubr.msk.bf16.gmra.mrb[32].mxu0 %vm1106_vm7, %v5630_v29  ;;  %v1698_v36 = vrot.slane %v5411_v41, 5  ;;  %v1701_v51 = vrot.slane %v5444_v33, 5  ;;  %v1689_v61 = vsel %vm5423_vm10, %v1687_v46, %v1688_v22  ;;  %v3800_v10 = vcombine.low %v5652_v55, %v5654_v30 }
 0x14f   : > { %4484 = vmatprep.mubr.msk.bf16.mxu0 %vm1106_vm7, %v5634_v4  ;;  %4328 = vmatprep.mubr.msk.bf16.mxu1 %vm1106_vm7, %v3799_v37  ;;  %v1697_v15 = vrot.slane %v1695_v32, 4  ;;  %v1692_v18 = vsel %vm5423_vm10, %v1690_v59, %v1691_v35  ;;  %v1696_v8 = vsel %vm5423_vm10, %v3838_v44, %v1695_v32  ;;  %v1708_v37 = vrot.slane %v5476_v17, 5  ;;  %v4930_v32 = vld [vmem:[%s6315_s2 + $0x28] sm:$0xff]  }
 0x150   : > { %v1700_v19 = vrot.slane %v1698_v36, 4  ;;  %v1703_v22 = vrot.slane %v1701_v51, 4  ;;  %v1704_v46 = vrot.slane %v5446_v50, 5  ;;  %v5664_v59 = vcombine.low %v1689_v61, %v1692_v18 }
 0x151   : > { %v1699_v60 = vsel %vm5423_vm10, %v1697_v15, %v1698_v36  ;;  %v5668_v35 = vcombine.low %v5292_v0, %v5313_v49  ;;  %v3839_v54 = vrot.slane %v5464_v11, 9  ;;  %v1710_v50 = vrot.slane %v1708_v37, 4 }
 0x152   : > { %v5670_v20 = vcombine.low %v1696_v8, %v1699_v60  ;;  %v1711_v44 = vrot.slane %v5478_v57, 5  ;;  %v1714_v36 = vrot.slane %v5503_v9, 5  ;;  %v1702_v0 = vsel %vm5423_vm10, %v1700_v19, %v1701_v51  ;;  %v5705_v51 = vld [vmem:[%s6315_s2 + $0x30] sm:$0xff]  }
 0x153   : > { %v1705_v49 = vsel %vm5423_vm10, %v1703_v22, %v1704_v46  ;;  %v5691_v15 = vcombine.low %v5326_v43, %v5341_v7  ;;  %v1721_v61 = vrot.slane %v5537_v38, 5  ;;  %v1709_v18 = vsel %vm5423_vm10, %v3839_v54, %v1708_v37 }
 0x154   : > { %v5700_v8 = vcombine.low %v5349_v16, %v5369_v39  ;;  %v5707_v43 = vcombine.low %v1702_v0, %v1705_v49  ;;  %v1713_v7 = vrot.slane %v1711_v44, 4  ;;  %v1716_v60 = vrot.slane %v1714_v36, 4  ;;  %v5771_v0 = vld [vmem:[#allocation2 + $0xac] sm:$0xf] }
 0x155   : > { %v3840_v54 = vrot.slane %v5527_v13, 9  ;;  %v5715_v16 = vcombine.low %v5378_v3, %v5403_v26  ;;  %v5719_v39 = vcombine.low %v5411_v41, %v5444_v33  ;;  %v1723_v37 = vrot.slane %v1721_v61, 4 }
 0x156   : > { %4329 = vmatmul.mubr.msk.bf16.vlgmr.msra.gmra.mrb[24].mxu1 %vm1106_vm7, %v3800_v10  ;;  %4485 = vmatmul.mubr.msk.bf16.gmra.mrb[36].mxu0 %vm1106_vm7, %v5664_v59  ;;  %v1717_v10 = vrot.slane %v5512_v56, 5  ;;  %6365 = vst [vmem:[#allocation19_spill] sm:$0xff] %v5707_v43  ;;  %v1724_v56 = vrot.slane %v5556_v34, 5  ;;  %v5723_v19 = vcombine.low %v5464_v11, %v5476_v17  ;;  %v5727_v22 = vcombine.low %v5478_v57, %v5503_v9  ;;  %v5753_v57 = vld [vmem:[#allocation2 + $0xa4] sm:$0xf] }
 0x157   : > { %4332 = vmatprep.mubr.msk.bf16.mxu1 %vm1106_vm7, %v5238_v1  ;;  %4488 = vmatprep.mubr.msk.bf16.mxu0 %vm1106_vm7, %v5670_v20  ;;  %v5731_v46 = vcombine.low %v5527_v13, %v5537_v38  ;;  %v5737_v26 = vcombine.low %v5556_v34, %v5571_v6  ;;  %v1727_v41 = vrot.slane %v5571_v6, 5  ;;  %v1715_v33 = vsel %vm5423_vm10, %v1713_v7, %v1714_v36  ;;  %v5759_v38 = vld [vmem:[#allocation2 + $0xa8] sm:$0xf]  ;;  %v5762_v6 = vld [vmem:[#allocation2 + $0xa0] sm:$0xf] }
 0x158   : > { %4361 = vmatpush3.bf16.msra.mxu1 %v5189_v62  ;;  %v1712_v62 = vsel %vm5423_vm10, %v1710_v50, %v1711_v44  ;;  %v1718_v11 = vsel %vm5423_vm10, %v1716_v60, %v1717_v10  ;;  %v1726_v17 = vrot.slane %v1724_v56, 4  ;;  %v1722_v9 = vsel %vm5423_vm10, %v3840_v54, %v1721_v61  ;;  %v676_v60 = vld [vmem:[#allocation2 + $0xb0] sm:$0x1] }
 0x159   : > { %4362 = vmatprep.subr.bf16.mxu1 %v4930_v32  ;;  %v5733_v3 = vcombine.low %v1709_v18, %v1712_v62  ;;  %v1725_v13 = vsel %vm5423_vm10, %v1723_v37, %v1724_v56  ;;  %v2533_v34 = vrot.slane %v5753_v57, 5  ;;  %v5768_v50 = vcombine.low %v1715_v33, %v1718_v11 }
 0x15a   : > { %v1729_v44 = vrot.slane %v1727_v41, 4  ;;  %v1730_v36 = vrot.slane %v5578_v23, 5  ;;  %v5773_v49 = vcombine.low %v1722_v9, %v1725_v13  ;;  %v1728_v61 = vsel %vm5423_vm10, %v1726_v17, %v1727_v41 }
 0x15b   : > { %6366 = vst [vmem:[#allocation20_spill] sm:$0xff] %v5733_v3  ;;  %6367 = vst [vmem:[#allocation21_spill] sm:$0xff] %v5768_v50  ;;  %v3927_v18 = vrot.slane %v5762_v6, 9  ;;  %v2536_v10 = vrot.slane %v5759_v38, 5  ;;  %v2535_v62 = vrot.slane %v2533_v34, 4  ;;  %v2274_v7 = vshll.u32 %v5753_v57, 16 }
 0x15c   : > { %4363 = vmatpush3.bf16.msra.mxu1 %v4930_v32  ;;  %v5766_v32 = vcombine.low %v5234_v63, %v5261_v21  ;;  %6368 = vst [vmem:[#allocation22_spill] sm:$0xff] %v5773_v49  ;;  %v2265_v63 = vshrl.u32 %v5762_v6, 16  ;;  %v2268_v21 = vshll.u32 %v5762_v6, 16  ;;  %v2278_v23 = vshrl.u32 %v5753_v57, 16 }
 0x15d   : > { %4396 = vmatprep.subr.bf16.mxu1 %v5705_v51  ;;  %v2284_v54 = vshll.u32 %v5759_v38, 16  ;;  %v2288_v56 = vshrl.u32 %v5759_v38, 16  ;;  %v2294_v37 = vshll.u32 %v5771_v0, 16  ;;  %v2276_v11 = vrot.slane %v2274_v7, 5 }
 0x15e   : > { %4333 = vmatmul.mubr.msk.bf16.gmra.mrb[28].mxu1 %vm1106_vm7, %v5284_v52  ;;  %4489 = vmatmul.mubr.msk.bf16.gmra.mrb[40].mxu0 %vm1106_vm7, %v5707_v43  ;;  %v2267_v41 = vrot.slane %v2265_v63, 4  ;;  %v2270_v33 = vrot.slane %v2268_v21, 5  ;;  %v2298_v17 = vshrl.u32 %v5771_v0, 16  ;;  %v2280_v9 = vrot.slane %v2278_v23, 4 }
 0x15f   : > { %4336 = vmatprep.mubr.msk.bf16.mxu1 %vm1106_vm7, %v5242_v2  ;;  %4492 = vmatprep.mubr.msk.bf16.mxu0 %vm1106_vm7, %v5733_v3  ;;  %v2286_v13 = vrot.slane %v2284_v54, 5  ;;  %v2290_v52 = vrot.slane %v2288_v56, 4  ;;  %v2296_v1 = vrot.slane %v2294_v37, 5  ;;  %v1731_v12 = vsel %vm5423_vm10, %v1729_v44, %v1730_v36 }
 0x160   : > { %v2271_v27 = vor.u32 %v2270_v33, %v2267_v41  ;;  %v2304_v63 = vshll.u32 %v676_v60, 16  ;;  %v2534_v21 = vsel %vm5423_vm10, %v3927_v18, %v2533_v34  ;;  %v2539_v7 = vrot.slane %v5771_v0, 5 }
 0x161   : > { %v2281_v3 = vor.u32 %v2280_v9, %v2276_v11  ;;  %v2291_v24 = vor.u32 %v2290_v52, %v2286_v13  ;;  %v5802_v37 = vcombine.low %v1728_v61, %v1731_v12  ;;  %v2538_v36 = vrot.slane %v2536_v10, 4 }
 0x162   : > { %v2272_v23 = vrot.slane %v2271_v27, 4  ;;  %v2306_v56 = vrot.slane %v2304_v63, 5  ;;  %v2542_v41 = vrot.slane %v676_v60, 5  ;;  %v1630_v61 = vrot.slane %v5624_v47, 5  ;;  %v4949_v63 = vld [vmem:[#allocation2 + $0x10] sm:$0x1] }
 0x163   : > { %v2282_v43 = vrot.slane %v2281_v3, 4  ;;  %v2292_v44 = vrot.slane %v2291_v24, 4 }
 0x164   : > { %v2277_v33 = vsel %vm5160_vm6, %v2272_v23, %v2276_v11  ;;  %v1632_v60 = vrot.slane %v1630_v61, 4  ;;  %v1633_v11 = vrot.slane %v5652_v55, 5 }
 0x165   : > { %v2287_v52 = vsel %vm5160_vm6, %v2282_v43, %v2286_v13  ;;  %v2297_v27 = vsel %vm5160_vm6, %v2292_v44, %v2296_v1  ;;  %v5933_v44 = vld [vmem:[#allocation2 + $0xbc] sm:$0xf] }
 0x166   : > { %4337 = vmatmul.mubr.msk.bf16.gmra.mrb[32].mxu1 %vm1106_vm7, %v5766_v32  ;;  %4493 = vmatmul.mubr.msk.bf16.gmra.mrb[44].mxu0 %vm1106_vm7, %v5768_v50  ;;  %v2300_v50 = vrot.slane %v2298_v17, 4  ;;  %v2541_v17 = vrot.slane %v2539_v7, 4  ;;  %v5816_v24 = vcombine.low %v2277_v33, %v2287_v52  ;;  %v1634_v47 = vsel %vm5423_vm10, %v1632_v60, %v1633_v11  ;;  %v6370_v33 = vld [vmem:[#allocation8_spill] sm:$0xff]  ;;  %v6374_v52 = vld [vmem:[#allocation10_spill] sm:$0xff] }
 0x167   : > { %4340 = vmatprep.mubr.msk.bf16.mxu1 %vm1106_vm7, %v5257_v14  ;;  %4496 = vmatprep.mubr.msk.bf16.mxu0 %vm1106_vm7, %v5773_v49  ;;  %v2537_v49 = vsel %vm5423_vm10, %v2535_v62, %v2536_v10  ;;  %v4943_v10 = vld [vmem:[%s6315_s2 + $0x80] sm:$0xff]   ;;  %v3833_v62 = vrot.slane %v5622_v40, 9  ;;  %v1635_v55 = vrot.slane %v1633_v11, 4 }
 0x168   : > { %v2301_v54 = vor.u32 %v2300_v50, %v2296_v1  ;;  %v5806_v18 = vcombine.low %v2534_v21, %v2537_v49  ;;  %v2540_v1 = vsel %vm5423_vm10, %v2538_v36, %v2539_v7  ;;  %v2543_v3 = vsel %vm5423_vm10, %v2541_v17, %v2542_v41  ;;  %v4937_v49 = vld [vmem:[%s6315_s2 + $0x78] sm:$0xff]   ;;  %v5935_v36 = vld [vmem:[#allocation2 + $0xc0] sm:$0xf] }
 0x169   : > { %v5830_v50 = vcombine.low %v2540_v1, %v2543_v3  ;;  %v1631_v40 = vsel %vm5423_vm10, %v3833_v62, %v1630_v61  ;;  %v1639_v21 = vrot.slane %v4949_v63, 5  ;;  %v3957_v41 = vcombine.low %v5933_v44, %v5935_v36  ;;  %v6372_v17 = vld [vmem:[#allocation9_spill] sm:$0xff]  ;;  %v6377_v1 = vld [vmem:[#allocation12_spill] sm:$0xff]  ;;  %v6378_v3 = vld [vmem:[#allocation6_spill] sm:$0xff] }
 0x16a   : > { %v2302_v34 = vrot.slane %v2301_v54, 4  ;;  %v3845_v9 = vcombine.low %v1631_v40, %v1634_v47  ;;  %v4942_v54 = vld [vmem:[%s6315_s2 + $0x38] sm:$0xff]   ;;  %v6380_v61 = vld [vmem:[#allocation7_spill] sm:$0xff]  ;;  %v4951_v47 = vld [vmem:[%s6315_s2 + $0x48] sm:$0xff]  }
 0x16b   : > { %v6382_v62 = vld [vmem:[#allocation15_spill] sm:$0xff]  ;;  %v6383_v63 = vld [vmem:[#allocation16_spill] sm:$0xff] }
 0x16c   : > { %v2307_v12 = vsel %vm5160_vm6, %v2302_v34, %v2306_v56  ;;  %v4950_v56 = vld [vmem:[%s6315_s2 + $0x40] sm:$0xff]   ;;  %v6371_v34 = vld [vmem:[#allocation20_spill] sm:$0xff] }
 0x16d   : > { %v5824_v43 = vcombine.low %v2297_v27, %v2307_v12  ;;  %v6375_v27 = vld [vmem:[#allocation22_spill] sm:$0xff]  ;;  %v6376_v12 = vld [vmem:[#allocation11_spill] sm:$0xff] }
 0x16e   : > { %4341 = vmatmul.mubr.msk.bf16.gmra.mrb[36].mxu1 %vm1106_vm7, %v5668_v35  ;;  %4497 = vmatmul.mubr.msk.bf16.gmra.mrb[48].mxu0 %vm1106_vm7, %v5802_v37 }
 0x16f   : > { %4344 = vmatprep.mubr.msk.bf16.mxu1 %vm1106_vm7, %v5691_v15  ;;  %4500 = vmatprep.mubr.msk.bf16.mxu0 %vm1106_vm7, %v5806_v18 }
 0x176   : > { %4345 = vmatmul.mubr.msk.bf16.gmra.mrb[40].mxu1 %vm1106_vm7, %v5700_v8  ;;  %4501 = vmatmul.mubr.msk.bf16.gmra.mrb[52].mxu0 %vm1106_vm7, %v5830_v50 }
 0x177   : > { %4348 = vmatprep.mubr.msk.bf16.mxu1 %vm1106_vm7, %v5715_v16  ;;  %4508 = vmatprep.mubr.msk.bf16.mxu0 %vm1106_vm7, %v5242_v2 }
 0x17e   : > { %4349 = vmatmul.mubr.msk.bf16.gmra.mrb[44].mxu1 %vm1106_vm7, %v5719_v39  ;;  %4509 = vmatmul.mubr.msk.bf16.vlgmr.msra.gmra.mrb[24].mxu0 %vm1106_vm7, %v5766_v32 }
 0x17f   : > { %4541 = vmatpush3.bf16.msra.mxu0 %v5550_v45  ;;  %4352 = vmatprep.mubr.msk.bf16.mxu1 %vm1106_vm7, %v5723_v19  ;;  %v1636_v45 = vrot.slane %v5654_v30, 5 }
 0x180   : > { %4512 = vmatprep.mubr.msk.bf16.mxu0 %vm1106_vm7, %v5257_v14  ;;  %4542 = vmatprep.subr.bf16.mxu0 %v4937_v49 }
 0x181   : > { %v1638_v13 = vrot.slane %v1636_v45, 4  ;;  %v1637_v30 = vsel %vm5423_vm10, %v1635_v55, %v1636_v45 }
 0x183   : > { %4543 = vmatpush3.bf16.msra.mxu0 %v4937_v49  ;;  %v1640_v7 = vsel %vm5423_vm10, %v1638_v13, %v1639_v21  ;;  %v6379_v49 = vld [vmem:[#allocation13_spill] sm:$0xff]  ;;  %v3016_v21 = vshrl.u32 %v5933_v44, 16 }
 0x184   : > { %4576 = vmatprep.subr.bf16.mxu0 %v4943_v10  ;;  %v3846_v23 = vcombine.low %v1637_v30, %v1640_v7  ;;  %v3026_v30 = vshrl.u32 %v5935_v36, 16  ;;  %v6384_v7 = vld [vmem:[#allocation17_spill] sm:$0xff] }
 0x186   : > { %4353 = vmatmul.mubr.msk.bf16.gmra.mrb[48].mxu1 %vm1106_vm7, %v5727_v22  ;;  %4513 = vmatmul.mubr.msk.bf16.gmra.mrb[28].mxu0 %vm1106_vm7, %v5668_v35 }
 0x187   : > { %4356 = vmatprep.mubr.msk.bf16.mxu1 %vm1106_vm7, %v5731_v46  ;;  %4516 = vmatprep.mubr.msk.bf16.mxu0 %vm1106_vm7, %v5691_v15 }
 0x18e   : > { %4357 = vmatmul.mubr.msk.bf16.gmra.mrb[52].mxu1 %vm1106_vm7, %v5737_v26  ;;  %4517 = vmatmul.mubr.msk.bf16.gmra.mrb[32].mxu0 %vm1106_vm7, %v5700_v8 }
 0x18f   : > { %4520 = vmatprep.mubr.msk.bf16.mxu0 %vm1106_vm7, %v5715_v16  ;;  %4364 = vmatprep.mubr.msk.bf16.mxu1 %vm1106_vm7, %v3845_v9 }
 0x196   : > { %4365 = vmatmul.mubr.msk.bf16.vlgmr.msra.gmra.mrb[24].mxu1 %vm1106_vm7, %v3846_v23  ;;  %4521 = vmatmul.mubr.msk.bf16.gmra.mrb[36].mxu0 %vm1106_vm7, %v5719_v39  ;;  %v3012_v23 = vshll.u32 %v5933_v44, 16 }
 0x197   : > { %4368 = vmatprep.mubr.msk.bf16.mxu1 %vm1106_vm7, %v5468_v25  ;;  %4524 = vmatprep.mubr.msk.bf16.mxu0 %vm1106_vm7, %v5723_v19  ;;  %v5906_v25 = vcombine.low %v5762_v6, %v5753_v57  ;;  %v5924_v6 = vcombine.low %v5759_v38, %v5771_v0  ;;  %v4944_v38 = vld [vmem:[%s6315_s2 + $0x88] sm:$0xff]   ;;  %v6369_v0 = vld [vmem:[#allocation19_spill] sm:$0xff] }
 0x198   : > { %4397 = vmatpush3.bf16.msra.mxu1 %v5705_v51  ;;  %v5918_v51 = vld [vmem:[#allocation2 + $0xb8] sm:$0xf] }
 0x199   : > { %4398 = vmatprep.subr.bf16.mxu1 %v4942_v54  ;;  %v3006_v45 = vshrl.u32 %v5918_v51, 16  ;;  %v3002_v40 = vshll.u32 %v5918_v51, 16  ;;  %v3261_v48 = vrot.slane %v5918_v51, 5 }
 0x19b   : > { %v3008_v13 = vrot.slane %v3006_v45, 4 }
 0x19c   : > { %4399 = vmatpush3.bf16.msra.mxu1 %v4942_v54  ;;  %v3022_v54 = vshll.u32 %v5935_v36, 16 }
 0x19d   : > { %4612 = vmatprep.subr.bf16.mxu1 %v4950_v56 }
 0x19e   : > { %4369 = vmatmul.mubr.msk.bf16.gmra.mrb[28].mxu1 %vm1106_vm7, %v5501_v5  ;;  %4525 = vmatmul.mubr.msk.bf16.gmra.mrb[40].mxu0 %vm1106_vm7, %v5727_v22  ;;  %v5916_v5 = vld [vmem:[#allocation2 + $0xb4] sm:$0xf] }
 0x19f   : > { %4372 = vmatprep.mubr.msk.bf16.mxu1 %vm1106_vm7, %v5542_v58  ;;  %4528 = vmatprep.mubr.msk.bf16.mxu0 %vm1106_vm7, %v5731_v46  ;;  %v3956_v57 = vcombine.low %v5916_v5, %v5918_v51  ;;  %v2993_v60 = vshrl.u32 %v5916_v5, 16  ;;  %v2996_v11 = vshll.u32 %v5916_v5, 16 }
 0x1a1   : > { %v2995_v55 = vrot.slane %v2993_v60, 4  ;;  %v2998_v9 = vrot.slane %v2996_v11, 5 }
 0x1a6   : > { %4373 = vmatmul.mubr.msk.bf16.gmra.mrb[32].mxu1 %vm1106_vm7, %v5576_v53  ;;  %4529 = vmatmul.mubr.msk.bf16.gmra.mrb[44].mxu0 %vm1106_vm7, %v5737_v26 }
 0x1a7   : > { %4376 = vmatprep.mubr.msk.bf16.mxu1 %vm1106_vm7, %v5600_v28  ;;  %4532 = vmatprep.mubr.msk.bf16.mxu0 %vm1106_vm7, %v5906_v25 }
 0x1ae   : > { %4377 = vmatmul.mubr.msk.bf16.gmra.mrb[36].mxu1 %vm1106_vm7, %v5630_v29  ;;  %4533 = vmatmul.mubr.msk.bf16.gmra.mrb[48].mxu0 %vm1106_vm7, %v5924_v6 }
 0x1af   : > { %4380 = vmatprep.mubr.msk.bf16.mxu1 %vm1106_vm7, %v5634_v4  ;;  %4536 = vmatprep.mubr.msk.bf16.mxu0 %vm1106_vm7, %v3956_v57 }
 0x1b6   : > { %4381 = vmatmul.mubr.msk.bf16.gmra.mrb[40].mxu1 %vm1106_vm7, %v5664_v59  ;;  %4537 = vmatmul.mubr.msk.bf16.gmra.mrb[52].mxu0 %vm1106_vm7, %v3957_v41  ;;  %v3018_v41 = vrot.slane %v3016_v21, 4 }
 0x1b7   : > { %4384 = vmatprep.mubr.msk.bf16.mxu1 %vm1106_vm7, %v5670_v20  ;;  %4544 = vmatprep.mubr.msk.bf16.mxu0 %vm1106_vm7, %v5272_v42  ;;  %v6373_v42 = vld [vmem:[#allocation21_spill] sm:$0xff] }
 0x1be   : > { %4385 = vmatmul.mubr.msk.bf16.gmra.mrb[44].mxu1 %vm1106_vm7, %v6369_v0  ;;  %4545 = vmatmul.mubr.msk.bf16.vlgmr.msra.gmra.mrb[24].mxu0 %vm1106_vm7, %v6370_v33  ;;  %v3028_v33 = vrot.slane %v3026_v30, 4 }
 0x1bf   : > { %4577 = vmatpush3.bf16.msra.mxu0 %v4943_v10  ;;  %4388 = vmatprep.mubr.msk.bf16.mxu1 %vm1106_vm7, %v6371_v34  ;;  %v6381_v10 = vld [vmem:[#allocation14_spill] sm:$0xff] }
 0x1c0   : > { %4548 = vmatprep.mubr.msk.bf16.mxu0 %vm1106_vm7, %v6372_v17  ;;  %4578 = vmatprep.subr.bf16.mxu0 %v4944_v38 }
 0x1c3   : > { %4579 = vmatpush3.bf16.msra.mxu0 %v4944_v38  ;;  %v3024_v38 = vrot.slane %v3022_v54, 5 }
 0x1c6   : > { %4389 = vmatmul.mubr.msk.bf16.gmra.mrb[48].mxu1 %vm1106_vm7, %v6373_v42  ;;  %4549 = vmatmul.mubr.msk.bf16.gmra.mrb[28].mxu0 %vm1106_vm7, %v6374_v52 }
 0x1c7   : > { %4392 = vmatprep.mubr.msk.bf16.mxu1 %vm1106_vm7, %v6375_v27  ;;  %4552 = vmatprep.mubr.msk.bf16.mxu0 %vm1106_vm7, %v6376_v12  ;;  %v6000_v12 = vld [vmem:[#allocation2 + $0xc4] sm:$0x1] }
 0x1ce   : > { %4393 = vmatmul.mubr.msk.bf16.gmra.mrb[52].mxu1 %vm1106_vm7, %v5802_v37  ;;  %4553 = vmatmul.mubr.msk.bf16.gmra.mrb[32].mxu0 %vm1106_vm7, %v6377_v1 }
 0x1cf   : > { %4400 = vmatprep.mubr.msk.bf16.mxu1 %vm1106_vm7, %v6378_v3  ;;  %4556 = vmatprep.mubr.msk.bf16.mxu0 %vm1106_vm7, %v6379_v49  ;;  %v3029_v3 = vor.u32 %v3028_v33, %v3024_v38 }
 0x1d6   : > { %4401 = vmatmul.mubr.msk.bf16.vlgmr.msra.gmra.mrb[24].mxu1 %vm1106_vm7, %v6380_v61  ;;  %4557 = vmatmul.mubr.msk.bf16.gmra.mrb[36].mxu0 %vm1106_vm7, %v6381_v10  ;;  %v3032_v61 = vshll.u32 %v6000_v12, 16 }
 0x1d7   : > { %4404 = vmatprep.mubr.msk.bf16.mxu1 %vm1106_vm7, %v5242_v2  ;;  %4560 = vmatprep.mubr.msk.bf16.mxu0 %vm1106_vm7, %v6382_v62  ;;  %v3004_v2 = vrot.slane %v3002_v40, 5  ;;  %v3030_v40 = vrot.slane %v3029_v3, 4 }
 0x1d8   : > { %4614 = vmatpush3.bf16.msra.mxu1 %v4950_v56  ;;  %v2999_v56 = vor.u32 %v2998_v9, %v2995_v55 }
 0x1d9   : > { %4613 = vmatprep.subr.bf16.mxu1 %v4951_v47  ;;  %v3009_v57 = vor.u32 %v3008_v13, %v3004_v2 }
 0x1da   : > { %v3000_v17 = vrot.slane %v2999_v56, 4 }
 0x1db   : > { %v3010_v52 = vrot.slane %v3009_v57, 4 }
 0x1dc   : > { %4615 = vmatpush3.bf16.msra.mxu1 %v4951_v47  ;;  %v3005_v60 = vsel %vm5160_vm6, %v3000_v17, %v3004_v2  ;;  %v3034_v47 = vrot.slane %v3032_v61, 5  ;;  %v6121_v2 = vld [vmem:[%s6317_s4] ss:$0 sm:$0xff] }
 0x1de   : > { %4405 = vmatmul.mubr.msk.bf16.gmra.mrb[28].mxu1 %vm1106_vm7, %v5766_v32  ;;  %4561 = vmatmul.mubr.msk.bf16.gmra.mrb[40].mxu0 %vm1106_vm7, %v6383_v63  ;;  %v3014_v32 = vrot.slane %v3012_v23, 5  ;;  %v3035_v55 = vsel %vm5160_vm6, %v3030_v40, %v3034_v47 }
 0x1df   : > { %4408 = vmatprep.mubr.msk.bf16.mxu1 %vm1106_vm7, %v5257_v14  ;;  %4564 = vmatprep.mubr.msk.bf16.mxu0 %vm1106_vm7, %v6384_v7  ;;  %v6385_v14 = vld [vmem:[#allocation18_spill] sm:$0xff] }
 0x1e0   : > { %v3019_v1 = vor.u32 %v3018_v41, %v3014_v32  ;;  %v3015_v11 = vsel %vm5160_vm6, %v3010_v52, %v3014_v32 }
 0x1e2   : > { %v3020_v45 = vrot.slane %v3019_v1, 4 }
 0x1e6   : > { %4409 = vmatmul.mubr.msk.bf16.gmra.mrb[32].mxu1 %vm1106_vm7, %v5668_v35  ;;  %4565 = vmatmul.mubr.msk.bf16.gmra.mrb[44].mxu0 %vm1106_vm7, %v6385_v14  ;;  %v3980_v35 = vcombine.low %v3005_v60, %v3015_v11 }
 0x1e7   : > { %4412 = vmatprep.mubr.msk.bf16.mxu1 %vm1106_vm7, %v5691_v15  ;;  %4568 = vmatprep.mubr.msk.bf16.mxu0 %vm1106_vm7, %v5816_v24  ;;  %v3025_v15 = vsel %vm5160_vm6, %v3020_v45, %v3024_v38 }
 0x1e8   : > { %v3981_v9 = vcombine.low %v3025_v15, %v3035_v55 }
 0x1ee   : > { %4413 = vmatmul.mubr.msk.bf16.gmra.mrb[36].mxu1 %vm1106_vm7, %v5700_v8  ;;  %4569 = vmatmul.mubr.msk.bf16.gmra.mrb[48].mxu0 %vm1106_vm7, %v5824_v43 }
 0x1ef   : > { %4416 = vmatprep.mubr.msk.bf16.mxu1 %vm1106_vm7, %v5715_v16  ;;  %4572 = vmatprep.mubr.msk.bf16.mxu0 %vm1106_vm7, %v3980_v35 }
 0x1f6   : > { %4417 = vmatmul.mubr.msk.bf16.gmra.mrb[40].mxu1 %vm1106_vm7, %v5719_v39  ;;  %4573 = vmatmul.mubr.msk.bf16.gmra.mrb[52].mxu0 %vm1106_vm7, %v3981_v9  ;;  %v3270_v39 = vrot.slane %v6000_v12, 5 }
 0x1f7   : > { %4420 = vmatprep.mubr.msk.bf16.mxu1 %vm1106_vm7, %v5723_v19  ;;  %4580 = vmatprep.mubr.msk.bf16.mxu0 %vm1106_vm7, %v5542_v58  ;;  %v4000_v58 = vrot.slane %v5916_v5, 9 }
 0x1fe   : > { %4421 = vmatmul.mubr.msk.bf16.gmra.mrb[44].mxu1 %vm1106_vm7, %v5727_v22  ;;  %4581 = vmatmul.mubr.msk.bf16.vlgmr.msra.gmra.mrb[24].mxu0 %vm1106_vm7, %v5576_v53  ;;  %v3263_v53 = vrot.slane %v3261_v48, 4 }
 0x1ff   : > { %4424 = vmatprep.mubr.msk.bf16.mxu1 %vm1106_vm7, %v5731_v46  ;;  %4584 = vmatprep.mubr.msk.bf16.mxu0 %vm1106_vm7, %v5600_v28  ;;  %v3264_v28 = vrot.slane %v5933_v44, 5 }
 0x201   : > { %v3266_v8 = vrot.slane %v3264_v28, 4 }
 0x206   : > { %4425 = vmatmul.mubr.msk.bf16.gmra.mrb[48].mxu1 %vm1106_vm7, %v5737_v26  ;;  %4585 = vmatmul.mubr.msk.bf16.gmra.mrb[28].mxu0 %vm1106_vm7, %v5630_v29  ;;  %v3262_v29 = vsel %vm5423_vm10, %v4000_v58, %v3261_v48 }
 0x207   : > { %4428 = vmatprep.mubr.msk.bf16.mxu1 %vm1106_vm7, %v5906_v25  ;;  %4588 = vmatprep.mubr.msk.bf16.mxu0 %vm1106_vm7, %v5634_v4  ;;  %v3265_v4 = vsel %vm5423_vm10, %v3263_v53, %v3264_v28 }
 0x20e   : > { %4429 = vmatmul.mubr.msk.bf16.gmra.mrb[52].mxu1 %vm1106_vm7, %v5924_v6  ;;  %4589 = vmatmul.mubr.msk.bf16.gmra.mrb[32].mxu0 %vm1106_vm7, %v5664_v59  ;;  %v4005_v59 = vcombine.low %v3262_v29, %v3265_v4 }
 0x20f   : > { %4452 = vmatprep.mubr.msk.bf16.mxu1 %vm1106_vm7, %v6379_v49  ;;  %4592 = vmatprep.mubr.msk.bf16.mxu0 %vm1106_vm7, %v5670_v20  ;;  %v3267_v20 = vrot.slane %v5935_v36, 5  ;;  %v6116_v49 = vld [vmem:[%s6316_s3] ss:$0 sm:$0xff] }
 0x211   : > { %v3269_v16 = vrot.slane %v3267_v20, 4  ;;  %v3268_v19 = vsel %vm5423_vm10, %v3266_v8, %v3267_v20 }
 0x213   : > { %v3271_v22 = vsel %vm5423_vm10, %v3269_v16, %v3270_v39 }
 0x214   : > { %v4006_v46 = vcombine.low %v3268_v19, %v3271_v22 }
 0x216   : > { %4453 = vmatmul.mubr.msk.bf16.vlgmr.msra.gmra.mrb[40].mxu1 %vm1106_vm7, %v6381_v10  ;;  %4593 = vmatmul.mubr.msk.bf16.gmra.mrb[36].mxu0 %vm1106_vm7, %v6369_v0 }
 0x217   : > { %4456 = vmatprep.mubr.msk.bf16.mxu1 %vm1106_vm7, %v6382_v62  ;;  %4596 = vmatprep.mubr.msk.bf16.mxu0 %vm1106_vm7, %v6371_v34 }
 0x21e   : > { %4457 = vmatmul.mubr.msk.bf16.gmra.mrb[44].mxu1 %vm1106_vm7, %v6383_v63  ;;  %4597 = vmatmul.mubr.msk.bf16.gmra.mrb[40].mxu0 %vm1106_vm7, %v6373_v42 }
 0x21f   : > { %4460 = vmatprep.mubr.msk.bf16.mxu1 %vm1106_vm7, %v6384_v7  ;;  %4600 = vmatprep.mubr.msk.bf16.mxu0 %vm1106_vm7, %v6375_v27 }
 0x226   : > { %4461 = vmatmul.mubr.msk.bf16.gmra.mrb[48].mxu1 %vm1106_vm7, %v6385_v14  ;;  %4601 = vmatmul.mubr.msk.bf16.gmra.mrb[44].mxu0 %vm1106_vm7, %v5802_v37 }
 0x227   : > { %4464 = vmatprep.mubr.msk.bf16.mxu1 %vm1106_vm7, %v5816_v24  ;;  %4604 = vmatprep.mubr.msk.bf16.mxu0 %vm1106_vm7, %v5806_v18 }
 0x22e   : > { %4465 = vmatmul.mubr.msk.bf16.gmra.mrb[52].mxu1 %vm1106_vm7, %v5824_v43  ;;  %4605 = vmatmul.mubr.msk.bf16.gmra.mrb[48].mxu0 %vm1106_vm7, %v5830_v50 }
 0x22f   : > { %4608 = vmatprep.mubr.msk.bf16.mxu0 %vm1106_vm7, %v4005_v59 }
 0x236   : > { %4609 = vmatmul.mubr.msk.bf16.gmra.mrb[52].mxu0 %vm1106_vm7, %v4006_v46 }
 0x2a9   : > { %v4402_v26 = vpop.f32.mrb[24].mxu1 }
 0x2aa   : > { %v2105_v37 = vpop.f32.mrb[25].mxu1 }
 0x2ab   : > { %v4403_v18 = vpop.f32.mrb[26].mxu1 }
 0x2ac   : > { %v2108_v24 = vpop.f32.mrb[27].mxu1 }
 0x2b1   : > { %v4406_v43 = vpop.f32.mrb[28].mxu1 }
 0x2b2   : > { %v2121_v25 = vpop.f32.mrb[29].mxu1 }
 0x2b3   : > { %v4407_v5 = vpop.f32.mrb[30].mxu1 }
 0x2b4   : > { %v2124_v50 = vpop.f32.mrb[31].mxu1 }
 0x2b9   : > { %v4410_v51 = vpop.f32.mrb[32].mxu1 }
 0x2ba   : > { %v2137_v6 = vpop.f32.mrb[33].mxu1 }
 0x2bb   : > { %v6100_v44 = vpop.f32.mrb[34].mxu1 }
 0x2bc   : > { %v6102_v36 = vpop.f32.mrb[35].mxu1 }
 0x2c1   : > { %v6104_v31 = vpop.f32.mrb[36].mxu1 }
 0x2c2   : > { %v6106_v0 = vpop.f32.mrb[37].mxu1 }
 0x2c3   : > { %v6108_v34 = vpop.f32.mrb[38].mxu1 }
 0x2c4   : > { %v6110_v42 = vpop.f32.mrb[39].mxu1 }
 0x2d1   : > { %v4582_v27 = vpop.f32.mrb[24].mxu0 }
 0x2d2   : > { %v4616_v10 = vadd.f32 %v4582_v27, %v4402_v26  ;;  %v3335_v62 = vpop.f32.mrb[25].mxu0 }
 0x2d3   : > { %v4617_v13 = vadd.f32 %v3335_v62, %v2105_v37  ;;  %v4583_v63 = vpop.f32.mrb[26].mxu0 }
 0x2d4   : > { %v3503_v21 = vmul.f32 %v4616_v10, %v6116_v49  ;;  %v4618_v30 = vadd.f32 %v4583_v63, %v4403_v18  ;;  %v3338_v7 = vpop.f32.mrb[27].mxu0 }
 0x2d5   : > { %v3501_v23 = vmul.f32 %v4617_v13, %v6116_v49  ;;  %v4619_v54 = vadd.f32 %v3338_v7, %v2108_v24 }
 0x2d6   : > { %v3542_v56 = vadd.f32 %v6121_v2, %v3503_v21  ;;  %v3504_v57 = vmul.f32 %v4618_v30, %v6116_v49 }
 0x2d7   : > { %v3540_v32 = vadd.f32 %v6121_v2, %v3501_v23  ;;  %v3502_v41 = vmul.f32 %v4619_v54, %v6116_v49 }
 0x2d8   : > { %v3574_v38 = vmax.f32 %v3542_v56, 0.0  ;;  %v3543_v33 = vadd.f32 %v6121_v2, %v3504_v57 }
 0x2d9   : > { %v3572_v17 = vmax.f32 %v3540_v32, 0.0  ;;  %v3541_v52 = vadd.f32 %v6121_v2, %v3502_v41  ;;  %v4586_v12 = vpop.f32.mrb[28].mxu0 }
 0x2da   : > { %3607 = vst.msk [vmem:[%s6133_s14 + $0x10] sm:$0xff] %vm3604_vm11, %v3574_v38  ;;  %v3575_v14 = vmax.f32 %v3543_v33, 0.0  ;;  %v4620_v1 = vadd.f32 %v4586_v12, %v4406_v43  ;;  %v3351_v3 = vpop.f32.mrb[29].mxu0 }
 0x2db   : > { %3605 = vst.msk [vmem:[%s6133_s14] sm:$0xff] %vm3604_vm11, %v3572_v17  ;;  %v3573_v61 = vmax.f32 %v3541_v52, 0.0  ;;  %v4621_v60 = vadd.f32 %v3351_v3, %v2121_v25  ;;  %v4587_v11 = vpop.f32.mrb[30].mxu0 }
 0x2dc   : > { %3608 = vst.msk [vmem:[%s6133_s14 + $0x18] sm:$0xff] %vm3604_vm11, %v3575_v14  ;;  %v3507_v35 = vmul.f32 %v4620_v1, %v6116_v49  ;;  %v4622_v45 = vadd.f32 %v4587_v11, %v4407_v5  ;;  %v3354_v40 = vpop.f32.mrb[31].mxu0 }
 0x2dd   : > { %3606 = vst.msk [vmem:[%s6133_s14 + $0x8] sm:$0xff] %vm3604_vm11, %v3573_v61  ;;  %v3505_v47 = vmul.f32 %v4621_v60, %v6116_v49  ;;  %v4623_v15 = vadd.f32 %v3354_v40, %v2124_v50 }
 0x2de   : > { %v3546_v55 = vadd.f32 %v6121_v2, %v3507_v35  ;;  %v3508_v9 = vmul.f32 %v4622_v45, %v6116_v49 }
 0x2df   : > { %v3544_v48 = vadd.f32 %v6121_v2, %v3505_v47  ;;  %v3506_v58 = vmul.f32 %v4623_v15, %v6116_v49 }
 0x2e0   : > { %v3578_v53 = vmax.f32 %v3546_v55, 0.0  ;;  %v3547_v28 = vadd.f32 %v6121_v2, %v3508_v9 }
 0x2e1   : > { %v3576_v20 = vmax.f32 %v3544_v48, 0.0  ;;  %v3545_v29 = vadd.f32 %v6121_v2, %v3506_v58  ;;  %v4590_v4 = vpop.f32.mrb[32].mxu0 }
 0x2e2   : > { %3611 = vst.msk [vmem:[%s6133_s14 + $0x30] sm:$0xff] %vm3604_vm11, %v3578_v53  ;;  %v3579_v59 = vmax.f32 %v3547_v28, 0.0  ;;  %v4624_v8 = vadd.f32 %v4590_v4, %v4410_v51  ;;  %v3367_v16 = vpop.f32.mrb[33].mxu0 }
 0x2e3   : > { %3609 = vst.msk [vmem:[%s6133_s14 + $0x20] sm:$0xff] %vm3604_vm11, %v3576_v20  ;;  %v3577_v39 = vmax.f32 %v3545_v29, 0.0  ;;  %v4625_v19 = vadd.f32 %v3367_v16, %v2137_v6  ;;  %v4591_v22 = vpop.f32.mrb[34].mxu0 }
 0x2e4   : > { %3612 = vst.msk [vmem:[%s6133_s14 + $0x38] sm:$0xff] %vm3604_vm11, %v3579_v59  ;;  %v3511_v46 = vmul.f32 %v4624_v8, %v6116_v49  ;;  %v4626_v26 = vadd.f32 %v4591_v22, %v6100_v44  ;;  %v3370_v37 = vpop.f32.mrb[35].mxu0 }
 0x2e5   : > { %3610 = vst.msk [vmem:[%s6133_s14 + $0x28] sm:$0xff] %vm3604_vm11, %v3577_v39  ;;  %v3509_v18 = vmul.f32 %v4625_v19, %v6116_v49  ;;  %v4627_v24 = vadd.f32 %v3370_v37, %v6102_v36 }
 0x2e6   : > { %v3550_v43 = vadd.f32 %v6121_v2, %v3511_v46  ;;  %v3512_v25 = vmul.f32 %v4626_v26, %v6116_v49 }
 0x2e7   : > { %v3548_v5 = vadd.f32 %v6121_v2, %v3509_v18  ;;  %v3510_v50 = vmul.f32 %v4627_v24, %v6116_v49 }
 0x2e8   : > { %v3582_v51 = vmax.f32 %v3550_v43, 0.0  ;;  %v3551_v6 = vadd.f32 %v6121_v2, %v3512_v25 }
 0x2e9   : > { %v3580_v44 = vmax.f32 %v3548_v5, 0.0  ;;  %v3549_v27 = vadd.f32 %v6121_v2, %v3510_v50  ;;  %v4454_v10 = vpop.f32.mrb[40].mxu1  ;;  %v4594_v62 = vpop.f32.mrb[36].mxu0 }
 0x2ea   : > { %3615 = vst.msk [vmem:[%s6133_s14 + $0x50] sm:$0xff] %vm3604_vm11, %v3582_v51  ;;  %v3583_v36 = vmax.f32 %v3551_v6, 0.0  ;;  %v4628_v13 = vadd.f32 %v4594_v62, %v6104_v31  ;;  %v2435_v63 = vpop.f32.mrb[41].mxu1  ;;  %v3383_v21 = vpop.f32.mrb[37].mxu0 }
 0x2eb   : > { %3613 = vst.msk [vmem:[%s6133_s14 + $0x40] sm:$0xff] %vm3604_vm11, %v3580_v44  ;;  %v3581_v30 = vmax.f32 %v3549_v27, 0.0  ;;  %v4629_v7 = vadd.f32 %v3383_v21, %v6106_v0  ;;  %v4455_v23 = vpop.f32.mrb[42].mxu1  ;;  %v4595_v54 = vpop.f32.mrb[38].mxu0 }
 0x2ec   : > { %3616 = vst.msk [vmem:[%s6133_s14 + $0x58] sm:$0xff] %vm3604_vm11, %v3583_v36  ;;  %v3515_v56 = vmul.f32 %v4628_v13, %v6116_v49  ;;  %v4630_v57 = vadd.f32 %v4595_v54, %v6108_v34  ;;  %v2438_v32 = vpop.f32.mrb[43].mxu1  ;;  %v3386_v41 = vpop.f32.mrb[39].mxu0 }
 0x2ed   : > { %3614 = vst.msk [vmem:[%s6133_s14 + $0x48] sm:$0xff] %vm3604_vm11, %v3581_v30  ;;  %v3513_v31 = vmul.f32 %v4629_v7, %v6116_v49  ;;  %v4631_v38 = vadd.f32 %v3386_v41, %v6110_v42 }
 0x2ee   : > { %v3554_v0 = vadd.f32 %v6121_v2, %v3515_v56  ;;  %v3516_v33 = vmul.f32 %v4630_v57, %v6116_v49 }
 0x2ef   : > { %v3552_v17 = vadd.f32 %v6121_v2, %v3513_v31  ;;  %v3514_v52 = vmul.f32 %v4631_v38, %v6116_v49 }
 0x2f0   : > { %v3586_v12 = vmax.f32 %v3554_v0, 0.0  ;;  %v3555_v34 = vadd.f32 %v6121_v2, %v3516_v33 }
 0x2f1   : > { %v3584_v14 = vmax.f32 %v3552_v17, 0.0  ;;  %v3553_v1 = vadd.f32 %v6121_v2, %v3514_v52  ;;  %v4458_v3 = vpop.f32.mrb[44].mxu1  ;;  %v4598_v61 = vpop.f32.mrb[40].mxu0 }
 0x2f2   : > { %3619 = vst.msk [vmem:[%s6133_s14 + $0x70] sm:$0xff] %vm3604_vm11, %v3586_v12  ;;  %v3587_v42 = vmax.f32 %v3555_v34, 0.0  ;;  %v4632_v60 = vadd.f32 %v4598_v61, %v4454_v10  ;;  %v2451_v11 = vpop.f32.mrb[45].mxu1  ;;  %v3399_v35 = vpop.f32.mrb[41].mxu0 }
 0x2f3   : > { %3617 = vst.msk [vmem:[%s6133_s14 + $0x60] sm:$0xff] %vm3604_vm11, %v3584_v14  ;;  %v3585_v45 = vmax.f32 %v3553_v1, 0.0  ;;  %v4633_v40 = vadd.f32 %v3399_v35, %v2435_v63  ;;  %v4459_v47 = vpop.f32.mrb[46].mxu1  ;;  %v4599_v15 = vpop.f32.mrb[42].mxu0 }
 0x2f4   : > { %3620 = vst.msk [vmem:[%s6133_s14 + $0x78] sm:$0xff] %vm3604_vm11, %v3587_v42  ;;  %v3519_v55 = vmul.f32 %v4632_v60, %v6116_v49  ;;  %v4634_v9 = vadd.f32 %v4599_v15, %v4455_v23  ;;  %v2454_v48 = vpop.f32.mrb[47].mxu1  ;;  %v3402_v58 = vpop.f32.mrb[43].mxu0 }
 0x2f5   : > { %3618 = vst.msk [vmem:[%s6133_s14 + $0x68] sm:$0xff] %vm3604_vm11, %v3585_v45  ;;  %v3517_v53 = vmul.f32 %v4633_v40, %v6116_v49  ;;  %v4635_v28 = vadd.f32 %v3402_v58, %v2438_v32 }
 0x2f6   : > { %v3558_v20 = vadd.f32 %v6121_v2, %v3519_v55  ;;  %v3520_v29 = vmul.f32 %v4634_v9, %v6116_v49 }
 0x2f7   : > { %v3556_v4 = vadd.f32 %v6121_v2, %v3517_v53  ;;  %v3518_v59 = vmul.f32 %v4635_v28, %v6116_v49 }
 0x2f8   : > { %v3590_v8 = vmax.f32 %v3558_v20, 0.0  ;;  %v3559_v16 = vadd.f32 %v6121_v2, %v3520_v29 }
 0x2f9   : > { %v3588_v39 = vmax.f32 %v3556_v4, 0.0  ;;  %v3557_v19 = vadd.f32 %v6121_v2, %v3518_v59  ;;  %v4462_v22 = vpop.f32.mrb[48].mxu1  ;;  %v4602_v46 = vpop.f32.mrb[44].mxu0 }
 0x2fa   : > { %3623 = vst.msk [vmem:[%s6133_s14 + $0x90] sm:$0xff] %vm3604_vm11, %v3590_v8  ;;  %v3591_v26 = vmax.f32 %v3559_v16, 0.0  ;;  %v4636_v37 = vadd.f32 %v4602_v46, %v4458_v3  ;;  %v2467_v18 = vpop.f32.mrb[49].mxu1  ;;  %v3415_v24 = vpop.f32.mrb[45].mxu0 }
 0x2fb   : > { %3621 = vst.msk [vmem:[%s6133_s14 + $0x80] sm:$0xff] %vm3604_vm11, %v3588_v39  ;;  %v3589_v43 = vmax.f32 %v3557_v19, 0.0  ;;  %v4637_v25 = vadd.f32 %v3415_v24, %v2451_v11  ;;  %v4463_v5 = vpop.f32.mrb[50].mxu1  ;;  %v4603_v50 = vpop.f32.mrb[46].mxu0 }
 0x2fc   : > { %3624 = vst.msk [vmem:[%s6133_s14 + $0x98] sm:$0xff] %vm3604_vm11, %v3591_v26  ;;  %v3523_v51 = vmul.f32 %v4636_v37, %v6116_v49  ;;  %v4638_v6 = vadd.f32 %v4603_v50, %v4459_v47  ;;  %v2470_v44 = vpop.f32.mrb[51].mxu1  ;;  %v3418_v27 = vpop.f32.mrb[47].mxu0 }
 0x2fd   : > { %3622 = vst.msk [vmem:[%s6133_s14 + $0x88] sm:$0xff] %vm3604_vm11, %v3589_v43  ;;  %v3521_v10 = vmul.f32 %v4637_v25, %v6116_v49  ;;  %v4639_v62 = vadd.f32 %v3418_v27, %v2454_v48 }
 0x2fe   : > { %v3562_v36 = vadd.f32 %v6121_v2, %v3523_v51  ;;  %v3524_v13 = vmul.f32 %v4638_v6, %v6116_v49 }
 0x2ff   : > { %v3560_v63 = vadd.f32 %v6121_v2, %v3521_v10  ;;  %v3522_v21 = vmul.f32 %v4639_v62, %v6116_v49 }
 0x300   : > { %v3594_v30 = vmax.f32 %v3562_v36, 0.0  ;;  %v3563_v7 = vadd.f32 %v6121_v2, %v3524_v13 }
 0x301   : > { %v3592_v23 = vmax.f32 %v3560_v63, 0.0  ;;  %v3561_v54 = vadd.f32 %v6121_v2, %v3522_v21  ;;  %v4466_v56 = vpop.f32.mrb[52].mxu1  ;;  %v4606_v57 = vpop.f32.mrb[48].mxu0 }
 0x302   : > { %3627 = vst.msk [vmem:[%s6133_s14 + $0xb0] sm:$0xff] %vm3604_vm11, %v3594_v30  ;;  %v3595_v32 = vmax.f32 %v3563_v7, 0.0  ;;  %v4640_v41 = vadd.f32 %v4606_v57, %v4462_v22  ;;  %v2483_v31 = vpop.f32.mrb[53].mxu1  ;;  %v3431_v38 = vpop.f32.mrb[49].mxu0 }
 0x303   : > { %3625 = vst.msk [vmem:[%s6133_s14 + $0xa0] sm:$0xff] %vm3604_vm11, %v3592_v23  ;;  %v3593_v0 = vmax.f32 %v3561_v54, 0.0  ;;  %v4641_v33 = vadd.f32 %v3431_v38, %v2467_v18  ;;  %v4467_v17 = vpop.f32.mrb[54].mxu1  ;;  %v4607_v52 = vpop.f32.mrb[50].mxu0 }
 0x304   : > { %3628 = vst.msk [vmem:[%s6133_s14 + $0xb8] sm:$0xff] %vm3604_vm11, %v3595_v32  ;;  %v3527_v12 = vmul.f32 %v4640_v41, %v6116_v49  ;;  %v4642_v34 = vadd.f32 %v4607_v52, %v4463_v5  ;;  %v2486_v14 = vpop.f32.mrb[55].mxu1  ;;  %v3434_v1 = vpop.f32.mrb[51].mxu0 }
 0x305   : > { %3626 = vst.msk [vmem:[%s6133_s14 + $0xa8] sm:$0xff] %vm3604_vm11, %v3593_v0  ;;  %v3525_v3 = vmul.f32 %v4641_v33, %v6116_v49  ;;  %v4643_v61 = vadd.f32 %v3434_v1, %v2470_v44 }
 0x306   : > { %v3566_v42 = vadd.f32 %v6121_v2, %v3527_v12  ;;  %v3528_v60 = vmul.f32 %v4642_v34, %v6116_v49 }
 0x307   : > { %v3564_v11 = vadd.f32 %v6121_v2, %v3525_v3  ;;  %v3526_v35 = vmul.f32 %v4643_v61, %v6116_v49 }
 0x308   : > { %v3598_v45 = vmax.f32 %v3566_v42, 0.0  ;;  %v3567_v40 = vadd.f32 %v6121_v2, %v3528_v60 }
 0x309   : > { %v3596_v47 = vmax.f32 %v3564_v11, 0.0  ;;  %v3565_v15 = vadd.f32 %v6121_v2, %v3526_v35  ;;  %v4610_v55 = vpop.f32.mrb[52].mxu0 }
 0x30a   : > { %3631 = vst.msk [vmem:[%s6133_s14 + $0xd0] sm:$0xff] %vm3604_vm11, %v3598_v45  ;;  %v3599_v9 = vmax.f32 %v3567_v40, 0.0  ;;  %v4644_v48 = vadd.f32 %v4610_v55, %v4466_v56  ;;  %v3447_v58 = vpop.f32.mrb[53].mxu0 }
 0x30b   : > { %3629 = vst.msk [vmem:[%s6133_s14 + $0xc0] sm:$0xff] %vm3604_vm11, %v3596_v47  ;;  %v3597_v53 = vmax.f32 %v3565_v15, 0.0  ;;  %v4645_v28 = vadd.f32 %v3447_v58, %v2483_v31  ;;  %v4611_v20 = vpop.f32.mrb[54].mxu0 }
 0x30c   : > { %3632 = vst.msk [vmem:[%s6133_s14 + $0xd8] sm:$0xff] %vm3604_vm11, %v3599_v9  ;;  %v3531_v29 = vmul.f32 %v4644_v48, %v6116_v49  ;;  %v4646_v4 = vadd.f32 %v4611_v20, %v4467_v17  ;;  %v3450_v59 = vpop.f32.mrb[55].mxu0 }
 0x30d   : > { %3630 = vst.msk [vmem:[%s6133_s14 + $0xc8] sm:$0xff] %vm3604_vm11, %v3597_v53  ;;  %v3529_v8 = vmul.f32 %v4645_v28, %v6116_v49  ;;  %v4647_v16 = vadd.f32 %v3450_v59, %v2486_v14 }
 0x30e   : > { %v3570_v39 = vadd.f32 %v6121_v2, %v3531_v29  ;;  %v3532_v19 = vmul.f32 %v4646_v4, %v6116_v49 }
 0x30f   : > { %v3568_v22 = vadd.f32 %v6121_v2, %v3529_v8  ;;  %v3530_v46 = vmul.f32 %v4647_v16, %v6116_v49 }
 0x310   : > { %v3602_v26 = vmax.f32 %v3570_v39, 0.0  ;;  %v3571_v37 = vadd.f32 %v6121_v2, %v3532_v19 }
 0x311   : > { %v3600_v18 = vmax.f32 %v3568_v22, 0.0  ;;  %v3569_v24 = vadd.f32 %v6121_v2, %v3530_v46 }
 0x312   : > { %3635 = vst.msk [vmem:[%s6133_s14 + $0xf0] sm:$0xff] %vm3604_vm11, %v3602_v26  ;;  %v3603_v43 = vmax.f32 %v3571_v37, 0.0 }
 0x313   : > { %3633 = vst.msk [vmem:[%s6133_s14 + $0xe0] sm:$0xff] %vm3604_vm11, %v3600_v18  ;;  %v3601_v49 = vmax.f32 %v3569_v24, 0.0 }
 0x314   : > { %3636 = vst.msk [vmem:[%s6133_s14 + $0xf8] sm:$0xff] %vm3604_vm11, %v3603_v43 }
 0x315   : > { %3634 = vst.msk [vmem:[%s6133_s14 + $0xe8] sm:$0xff] %vm3604_vm11, %v3601_v49 }
 0x316   : > { %4965 = shalt.err (!%p4962_p3)
}
 0x317   : > { %s4966_s8 = scalar_lea.hbm %s6260_s25, 4096  ;;  %s4970_s11 = scalar_lea.hbm %s6318_s5, 8192 }
 0x318   : > { %p4967_p4 = scmp.ne.s32.totalorder %s6260_s25, %s4966_s8  ;;  %p4971_p9 = scmp.lt.u32.totalorder %s6260_s25, %s6318_s5 }
 0x319   : > { %p4972_p10 = scmp.lt.u32.totalorder %s4970_s11, %s4966_s8  ;;  %p4974_p12 = scmp.lt.u32.totalorder %s4966_s8, %s6260_s25 }
 0x31a   : > { %p4968_p7 = pnand %p4967_p4, %p5090_p5 }
 0x31b   : > { %p4973_p11 = por %p4972_p10, %p4971_p9 }
 0x31c   : > { %p4969_p8 = pneg %p4968_p7 }
 0x31d   : > { %p4975_p13 = por %p4974_p12, %p4973_p11 }
 0x31f   : > { %p4976_p0 = pnand %p4975_p13, %p4969_p8 }
 0x321   : > { %4979 = shalt.err (!%p4976_p0)
}
 0x322   : > { %s5020_s14 = smov 128   ;;  %s5021_s15 = smov 8  }
 0x323   : > { %4872 = dma.vmem_to_hbm [thread:$0]  (%p5090_p5), %s6262_s16, 4096, %s6260_s25, %s6272_s22, %s5020_s14, %s5020_s14, %s5021_s15  }
 0x324 PF: > { %p4878_p1 = scmp.ge.s32.totalorder %s5014_s21, 2  ;;  %s3666_s17 = sand.u32 1, %s5002_s18  }
 0x325   : > { %s3667_s23 = scalar_lea.sflag [#allocation4], %s3666_s17 }
 0x326   : > { %p4875_p2 = pnand %p4878_p1, %p5094_p6 }
 0x328   : > { %4997 = dma.done.wait (!%p4875_p2), %s3667_s23, 4096  }
 0x329   : > { %4999 = vsyncadd (!%p4875_p2), %s3667_s23, 4294963200  ;;  %p15_p3 = scmp.ge.s32.totalorder %s5077_s24, 4   ;;  %s6386_s18 = smov %s5006_s19 }
 0x32a   : > { %s6387_s19 = smov %s5010_s20  ;;  %s6388_s20 = smov %s5088_s27 }
 0x32b   : > { %s6389_s21 = smov %s5077_s24  ;;  %17 = sbr.rel (!%p15_p3) target bundleno = 3 (0x3), region = 91 }
 0x332   :  { %3672 = vsyncpa [#allocation4], 1 }
 0x333   :  { %3674 = vsyncpa [#allocation4 + $0x1], 1 }

</bundles_post_ra>
